<compile_context>
chip_gen: v7x
topology: tpu7x:2x2x1
jax: 0.10.0
libtpu: 0.0.40
codegen_flags: <defaults>
</compile_context>

<pallas_src>
import functools

import jax
import jax.numpy as jnp
from jax.experimental import pallas as pl
from jax.experimental.pallas import tpu as pltpu


# -----------------------------------------------------------------------------
# Fused kernel: space1 conv -> space2 conv -> 2 classifier heads -> log_softmax
# -----------------------------------------------------------------------------
def _fused_kernel(tap_starts, num_channels, num_classes, width,
                  x_ref, w1_ref, b1_ref, w20_ref, w21_ref, b2_ref, mask_ref,
                  lw1_ref, lb1_ref, lw2_ref, lb2_ref, out_ref, vb1_scr):
    """One grid step == one batch element.  All intermediates stay on-chip."""
    X = x_ref[0]                       # (9*C_in, width): host-built im2col patch
    mask = mask_ref[...]               # (1, width): 1.0 on valid interior columns

    # ---- Space 1: relu(conv_{0->1}(x) + b) as ONE im2col matmul ----
    z1 = jnp.dot(w1_ref[...], X, preferred_element_type=jnp.float32) + b1_ref[...]
    vb1 = jnp.maximum(z1, 0.0) * mask                      # (C, width), lane-dense

    # Stage vb1 into a zero-guarded scratch so the 3x3 taps of the 1->2 edge are
    # cheap shifted slices (the zero guard supplies the conv zero-padding).
    vb1_scr[...] = jnp.zeros(vb1_scr.shape, jnp.float32)
    vb1_scr[:, 128:128 + width] = vb1                      # aligned 384-wide store

    # ---- Space 2: relu(conv_{0->2}(x) + conv_{1->2}(vb1) + b20 + b21) ----
    acc = jnp.dot(w20_ref[...], X, preferred_element_type=jnp.float32) + b2_ref[...]
    for t, start in enumerate(tap_starts):                 # 9 taps, M=4 matmuls
        acc = acc + jnp.dot(w21_ref[t], vb1_scr[:, start:start + width],
                            preferred_element_type=jnp.float32)
    vb2 = jnp.maximum(acc, 0.0) * mask                     # (C, width)

    # ---- Classifier heads (weights pre-permuted & zero-padded at init) ----
    def head(vb, lw_ref, lb_ref):
        logits = lb_ref[...]                               # (1, num_classes)
        for c in range(num_channels):
            logits = logits + jnp.dot(vb[c:c + 1, :], lw_ref[c],
                                      preferred_element_type=jnp.float32)
        return jnp.maximum(logits, 0.0)                    # per-head ReLU

    y = head(vb1, lw1_ref, lb1_ref) + head(vb2, lw2_ref, lb2_ref)

    m = jnp.max(y, axis=1, keepdims=True)
    lse = m + jnp.log(jnp.sum(jnp.exp(y - m), axis=1, keepdims=True))
    out_ref[...] = (y - lse).reshape(1, 1, num_classes)


# -----------------------------------------------------------------------------
# Deterministic HypergraphMachine instance
# -----------------------------------------------------------------------------
class HypergraphMachinePallas:
    def __init__(self, image_size=(4, 16, 16), num_channels=4, num_classes=10,
                 key=jax.random.PRNGKey(42)):
        self.input_channels = image_size[0]
        self.H, self.W = image_size[1], image_size[2]
        self.num_channels = num_channels
        self.num_classes = num_classes

        C_in, C, H, W = self.input_channels, num_channels, self.H, self.W
        NC = num_classes
        keys = jax.random.split(key, 5)

        def conv_init(k, cin, cout):
            bound = 1.0 / jnp.sqrt(cin * 9.0)
            kw, kb = jax.random.split(k)
            w_pt = jax.random.uniform(kw, (cout, cin, 3, 3), jnp.float32, -bound, bound)
            b = jax.random.uniform(kb, (cout,), jnp.float32, -bound, bound)
            return w_pt, b

        def lin_init(k, fin, fout):
            bound = 1.0 / jnp.sqrt(float(fin))
            kw, kb = jax.random.split(k)
            w_pt = jax.random.uniform(kw, (fout, fin), jnp.float32, -bound, bound)
            b = jax.random.uniform(kb, (fout,), jnp.float32, -bound, bound)
            return w_pt, b

        # PyTorch-layout parameters (also used by the pure-JAX reference).
        self.w10_pt, self.b10 = conv_init(keys[0], C_in, C)   # space0 -> space1
        self.w20_pt, self.b20 = conv_init(keys[1], C_in, C)   # space0 -> space2
        self.w21_pt, self.b21 = conv_init(keys[2], C, C)      # space1 -> space2
        in_feats = C * H * W
        self.lw1_pt, self.lb1 = lin_init(keys[3], in_feats, NC)
        self.lw2_pt, self.lb2 = lin_init(keys[4], in_feats, NC)

        # ---------------- kernel-layout constants, built once ----------------
        Hp, Wp = H + 2, W + 2
        P = Hp * Wp                              # padded-flat spatial positions
        OG = Wp + 1                              # max |3x3 tap offset| (guard)
        WL = -(-(P + 2 * OG) // 128) * 128       # lane-dense working width (384)
        self.Hp, self.Wp, self.P, self.OG, self.WL = Hp, Wp, P, OG, WL
        # tap offsets in padded-flat coordinates, row-major over (dy, dx)
        self.tap_offsets = tuple((dy - 1) * Wp + (dx - 1)
                                 for dy in range(3) for dx in range(3))
        self.scr_guard = 128                     # aligned left guard in scratch
        self.scr_width = self.scr_guard + WL + self.scr_guard   # 640 lanes

        def im2col_weight(w_pt):                 # (co,ci,3,3) -> (co, 9*ci), tap-major
            return jnp.transpose(w_pt, (0, 2, 3, 1)).reshape(w_pt.shape[0], -1)

        self.w1t = im2col_weight(self.w10_pt)                  # (C, 9*C_in)
        self.w20t = im2col_weight(self.w20_pt)                 # (C, 9*C_in)
        self.w21t = jnp.transpose(self.w21_pt, (2, 3, 0, 1)).reshape(9, C, C)
        self.b1col = self.b10.reshape(C, 1)
        self.b2col = (self.b20 + self.b21).reshape(C, 1)       # both edge biases

        # Column j of every working buffer <-> padded-flat position p = j - OG.
        jj = jnp.arange(WL)
        p = jj - OG
        ph, pw = p // Wp, p % Wp
        valid = (p >= 0) & (p < P) & (ph >= 1) & (ph <= H) & (pw >= 1) & (pw <= W)
        self.mask = valid.astype(jnp.float32)[None, :]         # (1, WL)

        hh = jnp.clip(ph - 1, 0, H - 1)
        ww = jnp.clip(pw - 1, 0, W - 1)
        feat = hh * W + ww                                     # h*W + w per column
        feat_cj = jnp.arange(C)[:, None] * (H * W) + feat[None, :]   # (C, WL)

        def head_weight(lw_pt):  # (NC, C*H*W) -> (C, WL, NC), zero off-interior
            lw = jnp.transpose(lw_pt)                          # (C*H*W, NC)
            return jnp.where(valid[None, :, None], lw[feat_cj], 0.0)

        self.lw1k = head_weight(self.lw1_pt)                   # (C, WL, NC)
        self.lw2k = head_weight(self.lw2_pt)
        self.lb1row = self.lb1.reshape(1, NC)
        self.lb2row = self.lb2.reshape(1, NC)

        # jit once; traced/compiled a single time per input shape.
        self._forward = jax.jit(self._forward_impl)

    # ---------------- forward (fused Pallas kernel) ----------------
    def forward(self, x_nchw):
        return self._forward(x_nchw)

    def _forward_impl(self, x_nchw):
        B = x_nchw.shape[0]
        C_in, C, NC = self.input_channels, self.num_channels, self.num_classes
        P, OG, WL = self.P, self.OG, self.WL

        # Host-side (XLA) im2col of the *input* space, computed once per call:
        # (B, 9*C_in, WL) -- one column per padded-flat output position,
        # one row block per 3x3 tap.  Feeds both input-image edges.
        xp = jnp.pad(x_nchw.astype(jnp.float32),
                     ((0, 0), (0, 0), (1, 1), (1, 1)))         # (B, C_in, Hp, Wp)
        xf = xp.reshape(B, C_in, P)
        xg = jnp.pad(xf, ((0, 0), (0, 0), (2 * OG, WL - P)))   # zero guard
        X = jnp.concatenate([xg[:, :, OG + off: OG + off + WL]
                             for off in self.tap_offsets], axis=1)

        tap_starts = tuple(self.scr_guard + off for off in self.tap_offsets)
        kernel = functools.partial(_fused_kernel, tap_starts, C, NC, WL)

        out = pl.pallas_call(
            kernel,
            out_shape=jax.ShapeDtypeStruct((B, 1, NC), jnp.float32),
            grid=(B,),
            in_specs=[
                pl.BlockSpec((1, 9 * C_in, WL), lambda i: (i, 0, 0)),   # X
                pl.BlockSpec((C, 9 * C_in), lambda i: (0, 0)),          # w1t
                pl.BlockSpec((C, 1), lambda i: (0, 0)),                 # b1
                pl.BlockSpec((C, 9 * C_in), lambda i: (0, 0)),          # w20t
                pl.BlockSpec((9, C, C), lambda i: (0, 0, 0)),           # w21t
                pl.BlockSpec((C, 1), lambda i: (0, 0)),                 # b2 (sum)
                pl.BlockSpec((1, WL), lambda i: (0, 0)),                # mask
                pl.BlockSpec((C, WL, NC), lambda i: (0, 0, 0)),         # lw1k
                pl.BlockSpec((1, NC), lambda i: (0, 0)),                # lb1
                pl.BlockSpec((C, WL, NC), lambda i: (0, 0, 0)),         # lw2k
                pl.BlockSpec((1, NC), lambda i: (0, 0)),                # lb2
            ],
            out_specs=pl.BlockSpec((1, 1, NC), lambda i: (i, 0, 0)),
            scratch_shapes=[pltpu.VMEM((C, self.scr_width), jnp.float32)],
            compiler_params=pltpu.CompilerParams(
                dimension_semantics=("parallel",)),
        )(X, self.w1t, self.b1col, self.w20t, self.w21t, self.b2col,
          self.mask, self.lw1k, self.lb1row, self.lw2k, self.lb2row)
        return out.reshape(B, NC)

    # ---------------- pure-JAX reference ----------------
    def reference(self, x_nchw):
        B = x_nchw.shape[0]

        def conv(x, w_pt, b):
            y = jax.lax.conv_general_dilated(
                x, w_pt, window_strides=(1, 1), padding=((1, 1), (1, 1)),
                dimension_numbers=('NCHW', 'OIHW', 'NCHW'))
            return y + b.reshape(1, -1, 1, 1)

        vb1 = jax.nn.relu(conv(x_nchw, self.w10_pt, self.b10))
        vb2 = jax.nn.relu(conv(x_nchw, self.w20_pt, self.b20)
                          + conv(vb1, self.w21_pt, self.b21))
        y = (jax.nn.relu(vb1.reshape(B, -1) @ self.lw1_pt.T + self.lb1[None, :])
             + jax.nn.relu(vb2.reshape(B, -1) @ self.lw2_pt.T + self.lb2[None, :]))
        return jax.nn.log_softmax(y, axis=1)


if __name__ == "__main__":
    B, C, H, W = 2, 4, 16, 16
    x = jax.random.normal(jax.random.PRNGKey(0), (B, C, H, W), jnp.float32)

    model = HypergraphMachinePallas(image_size=(C, H, W), num_channels=4,
                                    num_classes=10)

    out = jax.block_until_ready(model.forward(x))
    ref = jax.block_until_ready(model.reference(x))

    assert out.shape == (B, 10), out.shape
    err = float(jnp.max(jnp.abs(out - ref)))
    assert err < 1e-2, err

    print("KERNEL_OK")
</pallas_src>

<mosaic_0001>
module attributes {stable_mosaic.version = 11 : i64} {
  func.func @_fused_kernel(%arg0: i32, %arg1: memref<1x36x384xf32, #tpu.memory_space<vmem>>, %arg2: memref<4x36xf32, #tpu.memory_space<vmem>>, %arg3: memref<4x1xf32, #tpu.memory_space<vmem>>, %arg4: memref<4x36xf32, #tpu.memory_space<vmem>>, %arg5: memref<9x4x4xf32, #tpu.memory_space<vmem>>, %arg6: memref<4x1xf32, #tpu.memory_space<vmem>>, %arg7: memref<1x384xf32, #tpu.memory_space<vmem>>, %arg8: memref<4x384x10xf32, #tpu.memory_space<vmem>>, %arg9: memref<1x10xf32, #tpu.memory_space<vmem>>, %arg10: memref<4x384x10xf32, #tpu.memory_space<vmem>>, %arg11: memref<1x10xf32, #tpu.memory_space<vmem>>, %arg12: memref<1x1x10xf32, #tpu.memory_space<vmem>>, %arg13: memref<4x640xf32, #tpu.memory_space<vmem>>) attributes {dimension_semantics = [#tpu.dimension_semantics<parallel>], iteration_bounds = array<i64: 2>, scalar_prefetch = 0 : i64, scratch_operands = 1 : i64, tpu.core_type = #tpu.core_type<tc>, window_params = [{transform_indices = @transform_0, window_bounds = array<i64: 1, 36, 384>}, {pipeline_mode = #tpu.pipeline_mode<synchronous>, transform_indices = @transform_1, window_bounds = array<i64: 4, 36>}, {pipeline_mode = #tpu.pipeline_mode<synchronous>, transform_indices = @transform_2, window_bounds = array<i64: 4, 1>}, {pipeline_mode = #tpu.pipeline_mode<synchronous>, transform_indices = @transform_3, window_bounds = array<i64: 4, 36>}, {pipeline_mode = #tpu.pipeline_mode<synchronous>, transform_indices = @transform_4, window_bounds = array<i64: 9, 4, 4>}, {pipeline_mode = #tpu.pipeline_mode<synchronous>, transform_indices = @transform_5, window_bounds = array<i64: 4, 1>}, {pipeline_mode = #tpu.pipeline_mode<synchronous>, transform_indices = @transform_6, window_bounds = array<i64: 1, 384>}, {pipeline_mode = #tpu.pipeline_mode<synchronous>, transform_indices = @transform_7, window_bounds = array<i64: 4, 384, 10>}, {pipeline_mode = #tpu.pipeline_mode<synchronous>, transform_indices = @transform_8, window_bounds = array<i64: 1, 10>}, {pipeline_mode = #tpu.pipeline_mode<synchronous>, transform_indices = @transform_9, window_bounds = array<i64: 4, 384, 10>}, {pipeline_mode = #tpu.pipeline_mode<synchronous>, transform_indices = @transform_10, window_bounds = array<i64: 1, 10>}, {transform_indices = @transform_11, window_bounds = array<i64: 1, 1, 10>}]} {
    %c0 = arith.constant 0 : index
    %c0_0 = arith.constant 0 : index
    %c0_1 = arith.constant 0 : index
    %0 = vector.load %arg1[%c0, %c0_0, %c0_1] : memref<1x36x384xf32, #tpu.memory_space<vmem>>, vector<1x36x384xf32>
    %1 = vector.shape_cast %0 : vector<1x36x384xf32> to vector<36x384xf32>
    %c0_2 = arith.constant 0 : index
    %c0_3 = arith.constant 0 : index
    %2 = vector.load %arg7[%c0_2, %c0_3] : memref<1x384xf32, #tpu.memory_space<vmem>>, vector<1x384xf32>
    %c0_4 = arith.constant 0 : index
    %c0_5 = arith.constant 0 : index
    %3 = vector.load %arg2[%c0_4, %c0_5] : memref<4x36xf32, #tpu.memory_space<vmem>>, vector<4x36xf32>
    %cst = arith.constant dense<0.000000e+00> : vector<4x384xf32>
    %4 = tpu.matmul %3, %1, %cst {dimension_numbers = #tpu.dot_dimension_numbers<[1], [0], [0], [1], [0, 0, 1, 1], [], []>} : vector<4x36xf32>, vector<36x384xf32>, vector<4x384xf32> -> vector<4x384xf32>
    %c0_6 = arith.constant 0 : index
    %c0_7 = arith.constant 0 : index
    %5 = vector.load %arg3[%c0_6, %c0_7] : memref<4x1xf32, #tpu.memory_space<vmem>>, vector<4x1xf32>
    %6 = vector.broadcast %5 : vector<4x1xf32> to vector<4x384xf32>
    %7 = arith.addf %4, %6 : vector<4x384xf32>
    %cst_8 = arith.constant 0.000000e+00 : f32
    %8 = vector.broadcast %cst_8 : f32 to vector<4x384xf32>
    %9 = arith.maximumf %7, %8 : vector<4x384xf32>
    %10 = vector.broadcast %2 : vector<1x384xf32> to vector<4x384xf32>
    %11 = arith.mulf %9, %10 : vector<4x384xf32>
    %cst_9 = arith.constant 0.000000e+00 : f32
    %12 = vector.broadcast %cst_9 : f32 to vector<4x640xf32>
    %c0_10 = arith.constant 0 : index
    %c0_11 = arith.constant 0 : index
    %13 = vector.load %arg13[%c0_10, %c0_11] : memref<4x640xf32, #tpu.memory_space<vmem>>, vector<4x640xf32>
    tpu.vector_store %arg13[%c0_10, %c0_11], %12 {strides = array<i32>} : memref<4x640xf32, #tpu.memory_space<vmem>>, vector<4x640xf32>,
    %c0_12 = arith.constant 0 : index
    %c128 = arith.constant 128 : index
    %14 = vector.load %arg13[%c0_12, %c128] : memref<4x640xf32, #tpu.memory_space<vmem>>, vector<4x384xf32>
    tpu.vector_store %arg13[%c0_12, %c128], %11 {strides = array<i32>} : memref<4x640xf32, #tpu.memory_space<vmem>>, vector<4x384xf32>,
    %c0_13 = arith.constant 0 : index
    %c0_14 = arith.constant 0 : index
    %15 = vector.load %arg4[%c0_13, %c0_14] : memref<4x36xf32, #tpu.memory_space<vmem>>, vector<4x36xf32>
    %cst_15 = arith.constant dense<0.000000e+00> : vector<4x384xf32>
    %16 = tpu.matmul %15, %1, %cst_15 {dimension_numbers = #tpu.dot_dimension_numbers<[1], [0], [0], [1], [0, 0, 1, 1], [], []>} : vector<4x36xf32>, vector<36x384xf32>, vector<4x384xf32> -> vector<4x384xf32>
    %c0_16 = arith.constant 0 : index
    %c0_17 = arith.constant 0 : index
    %17 = vector.load %arg6[%c0_16, %c0_17] : memref<4x1xf32, #tpu.memory_space<vmem>>, vector<4x1xf32>
    %18 = vector.broadcast %17 : vector<4x1xf32> to vector<4x384xf32>
    %19 = arith.addf %16, %18 : vector<4x384xf32>
    %c0_18 = arith.constant 0 : index
    %c0_19 = arith.constant 0 : index
    %c0_20 = arith.constant 0 : index
    %20 = vector.load %arg5[%c0_18, %c0_19, %c0_20] : memref<9x4x4xf32, #tpu.memory_space<vmem>>, vector<1x4x4xf32>
    %21 = vector.shape_cast %20 : vector<1x4x4xf32> to vector<4x4xf32>
    %c0_21 = arith.constant 0 : index
    %c109 = arith.constant 109 : index
    %22 = vector.load %arg13[%c0_21, %c109] : memref<4x640xf32, #tpu.memory_space<vmem>>, vector<4x384xf32>
    %cst_22 = arith.constant dense<0.000000e+00> : vector<4x384xf32>
    %23 = tpu.matmul %21, %22, %cst_22 {dimension_numbers = #tpu.dot_dimension_numbers<[1], [0], [0], [1], [0, 0, 1, 1], [], []>} : vector<4x4xf32>, vector<4x384xf32>, vector<4x384xf32> -> vector<4x384xf32>
    %24 = arith.addf %19, %23 : vector<4x384xf32>
    %c1 = arith.constant 1 : index
    %c0_23 = arith.constant 0 : index
    %c0_24 = arith.constant 0 : index
    %25 = vector.load %arg5[%c1, %c0_23, %c0_24] : memref<9x4x4xf32, #tpu.memory_space<vmem>>, vector<1x4x4xf32>
    %26 = vector.shape_cast %25 : vector<1x4x4xf32> to vector<4x4xf32>
    %c0_25 = arith.constant 0 : index
    %c110 = arith.constant 110 : index
    %27 = vector.load %arg13[%c0_25, %c110] : memref<4x640xf32, #tpu.memory_space<vmem>>, vector<4x384xf32>
    %cst_26 = arith.constant dense<0.000000e+00> : vector<4x384xf32>
    %28 = tpu.matmul %26, %27, %cst_26 {dimension_numbers = #tpu.dot_dimension_numbers<[1], [0], [0], [1], [0, 0, 1, 1], [], []>} : vector<4x4xf32>, vector<4x384xf32>, vector<4x384xf32> -> vector<4x384xf32>
    %29 = arith.addf %24, %28 : vector<4x384xf32>
    %c2 = arith.constant 2 : index
    %c0_27 = arith.constant 0 : index
    %c0_28 = arith.constant 0 : index
    %30 = vector.load %arg5[%c2, %c0_27, %c0_28] : memref<9x4x4xf32, #tpu.memory_space<vmem>>, vector<1x4x4xf32>
    %31 = vector.shape_cast %30 : vector<1x4x4xf32> to vector<4x4xf32>
    %c0_29 = arith.constant 0 : index
    %c111 = arith.constant 111 : index
    %32 = vector.load %arg13[%c0_29, %c111] : memref<4x640xf32, #tpu.memory_space<vmem>>, vector<4x384xf32>
    %cst_30 = arith.constant dense<0.000000e+00> : vector<4x384xf32>
    %33 = tpu.matmul %31, %32, %cst_30 {dimension_numbers = #tpu.dot_dimension_numbers<[1], [0], [0], [1], [0, 0, 1, 1], [], []>} : vector<4x4xf32>, vector<4x384xf32>, vector<4x384xf32> -> vector<4x384xf32>
    %34 = arith.addf %29, %33 : vector<4x384xf32>
    %c3 = arith.constant 3 : index
    %c0_31 = arith.constant 0 : index
    %c0_32 = arith.constant 0 : index
    %35 = vector.load %arg5[%c3, %c0_31, %c0_32] : memref<9x4x4xf32, #tpu.memory_space<vmem>>, vector<1x4x4xf32>
    %36 = vector.shape_cast %35 : vector<1x4x4xf32> to vector<4x4xf32>
    %c0_33 = arith.constant 0 : index
    %c127 = arith.constant 127 : index
    %37 = vector.load %arg13[%c0_33, %c127] : memref<4x640xf32, #tpu.memory_space<vmem>>, vector<4x384xf32>
    %cst_34 = arith.constant dense<0.000000e+00> : vector<4x384xf32>
    %38 = tpu.matmul %36, %37, %cst_34 {dimension_numbers = #tpu.dot_dimension_numbers<[1], [0], [0], [1], [0, 0, 1, 1], [], []>} : vector<4x4xf32>, vector<4x384xf32>, vector<4x384xf32> -> vector<4x384xf32>
    %39 = arith.addf %34, %38 : vector<4x384xf32>
    %c4 = arith.constant 4 : index
    %c0_35 = arith.constant 0 : index
    %c0_36 = arith.constant 0 : index
    %40 = vector.load %arg5[%c4, %c0_35, %c0_36] : memref<9x4x4xf32, #tpu.memory_space<vmem>>, vector<1x4x4xf32>
    %41 = vector.shape_cast %40 : vector<1x4x4xf32> to vector<4x4xf32>
    %c0_37 = arith.constant 0 : index
    %c128_38 = arith.constant 128 : index
    %42 = vector.load %arg13[%c0_37, %c128_38] : memref<4x640xf32, #tpu.memory_space<vmem>>, vector<4x384xf32>
    %cst_39 = arith.constant dense<0.000000e+00> : vector<4x384xf32>
    %43 = tpu.matmul %41, %42, %cst_39 {dimension_numbers = #tpu.dot_dimension_numbers<[1], [0], [0], [1], [0, 0, 1, 1], [], []>} : vector<4x4xf32>, vector<4x384xf32>, vector<4x384xf32> -> vector<4x384xf32>
    %44 = arith.addf %39, %43 : vector<4x384xf32>
    %c5 = arith.constant 5 : index
    %c0_40 = arith.constant 0 : index
    %c0_41 = arith.constant 0 : index
    %45 = vector.load %arg5[%c5, %c0_40, %c0_41] : memref<9x4x4xf32, #tpu.memory_space<vmem>>, vector<1x4x4xf32>
    %46 = vector.shape_cast %45 : vector<1x4x4xf32> to vector<4x4xf32>
    %c0_42 = arith.constant 0 : index
    %c129 = arith.constant 129 : index
    %47 = vector.load %arg13[%c0_42, %c129] : memref<4x640xf32, #tpu.memory_space<vmem>>, vector<4x384xf32>
    %cst_43 = arith.constant dense<0.000000e+00> : vector<4x384xf32>
    %48 = tpu.matmul %46, %47, %cst_43 {dimension_numbers = #tpu.dot_dimension_numbers<[1], [0], [0], [1], [0, 0, 1, 1], [], []>} : vector<4x4xf32>, vector<4x384xf32>, vector<4x384xf32> -> vector<4x384xf32>
    %49 = arith.addf %44, %48 : vector<4x384xf32>
    %c6 = arith.constant 6 : index
    %c0_44 = arith.constant 0 : index
    %c0_45 = arith.constant 0 : index
    %50 = vector.load %arg5[%c6, %c0_44, %c0_45] : memref<9x4x4xf32, #tpu.memory_space<vmem>>, vector<1x4x4xf32>
    %51 = vector.shape_cast %50 : vector<1x4x4xf32> to vector<4x4xf32>
    %c0_46 = arith.constant 0 : index
    %c145 = arith.constant 145 : index
    %52 = vector.load %arg13[%c0_46, %c145] : memref<4x640xf32, #tpu.memory_space<vmem>>, vector<4x384xf32>
    %cst_47 = arith.constant dense<0.000000e+00> : vector<4x384xf32>
    %53 = tpu.matmul %51, %52, %cst_47 {dimension_numbers = #tpu.dot_dimension_numbers<[1], [0], [0], [1], [0, 0, 1, 1], [], []>} : vector<4x4xf32>, vector<4x384xf32>, vector<4x384xf32> -> vector<4x384xf32>
    %54 = arith.addf %49, %53 : vector<4x384xf32>
    %c7 = arith.constant 7 : index
    %c0_48 = arith.constant 0 : index
    %c0_49 = arith.constant 0 : index
    %55 = vector.load %arg5[%c7, %c0_48, %c0_49] : memref<9x4x4xf32, #tpu.memory_space<vmem>>, vector<1x4x4xf32>
    %56 = vector.shape_cast %55 : vector<1x4x4xf32> to vector<4x4xf32>
    %c0_50 = arith.constant 0 : index
    %c146 = arith.constant 146 : index
    %57 = vector.load %arg13[%c0_50, %c146] : memref<4x640xf32, #tpu.memory_space<vmem>>, vector<4x384xf32>
    %cst_51 = arith.constant dense<0.000000e+00> : vector<4x384xf32>
    %58 = tpu.matmul %56, %57, %cst_51 {dimension_numbers = #tpu.dot_dimension_numbers<[1], [0], [0], [1], [0, 0, 1, 1], [], []>} : vector<4x4xf32>, vector<4x384xf32>, vector<4x384xf32> -> vector<4x384xf32>
    %59 = arith.addf %54, %58 : vector<4x384xf32>
    %c8 = arith.constant 8 : index
    %c0_52 = arith.constant 0 : index
    %c0_53 = arith.constant 0 : index
    %60 = vector.load %arg5[%c8, %c0_52, %c0_53] : memref<9x4x4xf32, #tpu.memory_space<vmem>>, vector<1x4x4xf32>
    %61 = vector.shape_cast %60 : vector<1x4x4xf32> to vector<4x4xf32>
    %c0_54 = arith.constant 0 : index
    %c147 = arith.constant 147 : index
    %62 = vector.load %arg13[%c0_54, %c147] : memref<4x640xf32, #tpu.memory_space<vmem>>, vector<4x384xf32>
    %cst_55 = arith.constant dense<0.000000e+00> : vector<4x384xf32>
    %63 = tpu.matmul %61, %62, %cst_55 {dimension_numbers = #tpu.dot_dimension_numbers<[1], [0], [0], [1], [0, 0, 1, 1], [], []>} : vector<4x4xf32>, vector<4x384xf32>, vector<4x384xf32> -> vector<4x384xf32>
    %64 = arith.addf %59, %63 : vector<4x384xf32>
    %cst_56 = arith.constant 0.000000e+00 : f32
    %65 = vector.broadcast %cst_56 : f32 to vector<4x384xf32>
    %66 = arith.maximumf %64, %65 : vector<4x384xf32>
    %67 = vector.broadcast %2 : vector<1x384xf32> to vector<4x384xf32>
    %68 = arith.mulf %66, %67 : vector<4x384xf32>
    %c0_57 = arith.constant 0 : index
    %c0_58 = arith.constant 0 : index
    %69 = vector.load %arg9[%c0_57, %c0_58] : memref<1x10xf32, #tpu.memory_space<vmem>>, vector<1x10xf32>
    %70 = vector.extract_strided_slice %11 {offsets = [0, 0], sizes = [1, 384], strides = [1, 1]} : vector<4x384xf32> to vector<1x384xf32>
    %c0_59 = arith.constant 0 : index
    %c0_60 = arith.constant 0 : index
    %c0_61 = arith.constant 0 : index
    %71 = vector.load %arg8[%c0_59, %c0_60, %c0_61] : memref<4x384x10xf32, #tpu.memory_space<vmem>>, vector<1x384x10xf32>
    %72 = vector.shape_cast %71 : vector<1x384x10xf32> to vector<384x10xf32>
    %cst_62 = arith.constant dense<0.000000e+00> : vector<1x10xf32>
    %73 = tpu.matmul %70, %72, %cst_62 {dimension_numbers = #tpu.dot_dimension_numbers<[1], [0], [0], [1], [0, 0, 1, 1], [], []>} : vector<1x384xf32>, vector<384x10xf32>, vector<1x10xf32> -> vector<1x10xf32>
    %74 = arith.addf %69, %73 : vector<1x10xf32>
    %75 = vector.extract_strided_slice %11 {offsets = [1, 0], sizes = [1, 384], strides = [1, 1]} : vector<4x384xf32> to vector<1x384xf32>
    %c1_63 = arith.constant 1 : index
    %c0_64 = arith.constant 0 : index
    %c0_65 = arith.constant 0 : index
    %76 = vector.load %arg8[%c1_63, %c0_64, %c0_65] : memref<4x384x10xf32, #tpu.memory_space<vmem>>, vector<1x384x10xf32>
    %77 = vector.shape_cast %76 : vector<1x384x10xf32> to vector<384x10xf32>
    %cst_66 = arith.constant dense<0.000000e+00> : vector<1x10xf32>
    %78 = tpu.matmul %75, %77, %cst_66 {dimension_numbers = #tpu.dot_dimension_numbers<[1], [0], [0], [1], [0, 0, 1, 1], [], []>} : vector<1x384xf32>, vector<384x10xf32>, vector<1x10xf32> -> vector<1x10xf32>
    %79 = arith.addf %74, %78 : vector<1x10xf32>
    %80 = vector.extract_strided_slice %11 {offsets = [2, 0], sizes = [1, 384], strides = [1, 1]} : vector<4x384xf32> to vector<1x384xf32>
    %c2_67 = arith.constant 2 : index
    %c0_68 = arith.constant 0 : index
    %c0_69 = arith.constant 0 : index
    %81 = vector.load %arg8[%c2_67, %c0_68, %c0_69] : memref<4x384x10xf32, #tpu.memory_space<vmem>>, vector<1x384x10xf32>
    %82 = vector.shape_cast %81 : vector<1x384x10xf32> to vector<384x10xf32>
    %cst_70 = arith.constant dense<0.000000e+00> : vector<1x10xf32>
    %83 = tpu.matmul %80, %82, %cst_70 {dimension_numbers = #tpu.dot_dimension_numbers<[1], [0], [0], [1], [0, 0, 1, 1], [], []>} : vector<1x384xf32>, vector<384x10xf32>, vector<1x10xf32> -> vector<1x10xf32>
    %84 = arith.addf %79, %83 : vector<1x10xf32>
    %85 = vector.extract_strided_slice %11 {offsets = [3, 0], sizes = [1, 384], strides = [1, 1]} : vector<4x384xf32> to vector<1x384xf32>
    %c3_71 = arith.constant 3 : index
    %c0_72 = arith.constant 0 : index
    %c0_73 = arith.constant 0 : index
    %86 = vector.load %arg8[%c3_71, %c0_72, %c0_73] : memref<4x384x10xf32, #tpu.memory_space<vmem>>, vector<1x384x10xf32>
    %87 = vector.shape_cast %86 : vector<1x384x10xf32> to vector<384x10xf32>
    %cst_74 = arith.constant dense<0.000000e+00> : vector<1x10xf32>
    %88 = tpu.matmul %85, %87, %cst_74 {dimension_numbers = #tpu.dot_dimension_numbers<[1], [0], [0], [1], [0, 0, 1, 1], [], []>} : vector<1x384xf32>, vector<384x10xf32>, vector<1x10xf32> -> vector<1x10xf32>
    %89 = arith.addf %84, %88 : vector<1x10xf32>
    %cst_75 = arith.constant 0.000000e+00 : f32
    %90 = vector.broadcast %cst_75 : f32 to vector<1x10xf32>
    %91 = arith.maximumf %89, %90 : vector<1x10xf32>
    %c0_76 = arith.constant 0 : index
    %c0_77 = arith.constant 0 : index
    %92 = vector.load %arg11[%c0_76, %c0_77] : memref<1x10xf32, #tpu.memory_space<vmem>>, vector<1x10xf32>
    %93 = vector.extract_strided_slice %68 {offsets = [0, 0], sizes = [1, 384], strides = [1, 1]} : vector<4x384xf32> to vector<1x384xf32>
    %c0_78 = arith.constant 0 : index
    %c0_79 = arith.constant 0 : index
    %c0_80 = arith.constant 0 : index
    %94 = vector.load %arg10[%c0_78, %c0_79, %c0_80] : memref<4x384x10xf32, #tpu.memory_space<vmem>>, vector<1x384x10xf32>
    %95 = vector.shape_cast %94 : vector<1x384x10xf32> to vector<384x10xf32>
    %cst_81 = arith.constant dense<0.000000e+00> : vector<1x10xf32>
    %96 = tpu.matmul %93, %95, %cst_81 {dimension_numbers = #tpu.dot_dimension_numbers<[1], [0], [0], [1], [0, 0, 1, 1], [], []>} : vector<1x384xf32>, vector<384x10xf32>, vector<1x10xf32> -> vector<1x10xf32>
    %97 = arith.addf %92, %96 : vector<1x10xf32>
    %98 = vector.extract_strided_slice %68 {offsets = [1, 0], sizes = [1, 384], strides = [1, 1]} : vector<4x384xf32> to vector<1x384xf32>
    %c1_82 = arith.constant 1 : index
    %c0_83 = arith.constant 0 : index
    %c0_84 = arith.constant 0 : index
    %99 = vector.load %arg10[%c1_82, %c0_83, %c0_84] : memref<4x384x10xf32, #tpu.memory_space<vmem>>, vector<1x384x10xf32>
    %100 = vector.shape_cast %99 : vector<1x384x10xf32> to vector<384x10xf32>
    %cst_85 = arith.constant dense<0.000000e+00> : vector<1x10xf32>
    %101 = tpu.matmul %98, %100, %cst_85 {dimension_numbers = #tpu.dot_dimension_numbers<[1], [0], [0], [1], [0, 0, 1, 1], [], []>} : vector<1x384xf32>, vector<384x10xf32>, vector<1x10xf32> -> vector<1x10xf32>
    %102 = arith.addf %97, %101 : vector<1x10xf32>
    %103 = vector.extract_strided_slice %68 {offsets = [2, 0], sizes = [1, 384], strides = [1, 1]} : vector<4x384xf32> to vector<1x384xf32>
    %c2_86 = arith.constant 2 : index
    %c0_87 = arith.constant 0 : index
    %c0_88 = arith.constant 0 : index
    %104 = vector.load %arg10[%c2_86, %c0_87, %c0_88] : memref<4x384x10xf32, #tpu.memory_space<vmem>>, vector<1x384x10xf32>
    %105 = vector.shape_cast %104 : vector<1x384x10xf32> to vector<384x10xf32>
    %cst_89 = arith.constant dense<0.000000e+00> : vector<1x10xf32>
    %106 = tpu.matmul %103, %105, %cst_89 {dimension_numbers = #tpu.dot_dimension_numbers<[1], [0], [0], [1], [0, 0, 1, 1], [], []>} : vector<1x384xf32>, vector<384x10xf32>, vector<1x10xf32> -> vector<1x10xf32>
    %107 = arith.addf %102, %106 : vector<1x10xf32>
    %108 = vector.extract_strided_slice %68 {offsets = [3, 0], sizes = [1, 384], strides = [1, 1]} : vector<4x384xf32> to vector<1x384xf32>
    %c3_90 = arith.constant 3 : index
    %c0_91 = arith.constant 0 : index
    %c0_92 = arith.constant 0 : index
    %109 = vector.load %arg10[%c3_90, %c0_91, %c0_92] : memref<4x384x10xf32, #tpu.memory_space<vmem>>, vector<1x384x10xf32>
    %110 = vector.shape_cast %109 : vector<1x384x10xf32> to vector<384x10xf32>
    %cst_93 = arith.constant dense<0.000000e+00> : vector<1x10xf32>
    %111 = tpu.matmul %108, %110, %cst_93 {dimension_numbers = #tpu.dot_dimension_numbers<[1], [0], [0], [1], [0, 0, 1, 1], [], []>} : vector<1x384xf32>, vector<384x10xf32>, vector<1x10xf32> -> vector<1x10xf32>
    %112 = arith.addf %107, %111 : vector<1x10xf32>
    %cst_94 = arith.constant 0.000000e+00 : f32
    %113 = vector.broadcast %cst_94 : f32 to vector<1x10xf32>
    %114 = arith.maximumf %112, %113 : vector<1x10xf32>
    %115 = arith.addf %91, %114 : vector<1x10xf32>
    %cst_95 = arith.constant dense<0xFF800000> : vector<1xf32>
    %116 = vector.multi_reduction <maximumf>, %115, %cst_95 [1] : vector<1x10xf32> to vector<1xf32>
    %117 = vector.shape_cast %116 : vector<1xf32> to vector<1x1xf32>
    %118 = vector.broadcast %117 : vector<1x1xf32> to vector<1x10xf32>
    %119 = arith.subf %115, %118 : vector<1x10xf32>
    %120 = math.exp %119 : vector<1x10xf32>
    %cst_96 = arith.constant dense<0.000000e+00> : vector<1xf32>
    %121 = vector.multi_reduction <add>, %120, %cst_96 [1] : vector<1x10xf32> to vector<1xf32>
    %122 = vector.shape_cast %121 : vector<1xf32> to vector<1x1xf32>
    %123 = math.log %122 : vector<1x1xf32>
    %124 = arith.addf %117, %123 : vector<1x1xf32>
    %125 = vector.broadcast %124 : vector<1x1xf32> to vector<1x10xf32>
    %126 = arith.subf %115, %125 : vector<1x10xf32>
    %127 = vector.shape_cast %126 : vector<1x10xf32> to vector<1x1x10xf32>
    %c0_97 = arith.constant 0 : index
    %c0_98 = arith.constant 0 : index
    %c0_99 = arith.constant 0 : index
    %128 = vector.load %arg12[%c0_97, %c0_98, %c0_99] : memref<1x1x10xf32, #tpu.memory_space<vmem>>, vector<1x1x10xf32>
    tpu.vector_store %arg12[%c0_97, %c0_98, %c0_99], %127 {strides = array<i32>} : memref<1x1x10xf32, #tpu.memory_space<vmem>>, vector<1x1x10xf32>,
    return
  }
  func.func @transform_0(%arg0: i32) -> (i32, i32, i32) {
    %c0_i32 = arith.constant 0 : i32
    %c0_i32_0 = arith.constant 0 : i32
    %c0_i32_1 = arith.constant 0 : i32
    return %arg0, %c0_i32, %c0_i32_0 : i32, i32, i32
  }
  func.func @transform_1(%arg0: i32) -> (i32, i32) {
    %c0_i32 = arith.constant 0 : i32
    %c0_i32_0 = arith.constant 0 : i32
    %c0_i32_1 = arith.constant 0 : i32
    return %c0_i32, %c0_i32_0 : i32, i32
  }
  func.func @transform_2(%arg0: i32) -> (i32, i32) {
    %c0_i32 = arith.constant 0 : i32
    %c0_i32_0 = arith.constant 0 : i32
    %c0_i32_1 = arith.constant 0 : i32
    return %c0_i32, %c0_i32_0 : i32, i32
  }
  func.func @transform_3(%arg0: i32) -> (i32, i32) {
    %c0_i32 = arith.constant 0 : i32
    %c0_i32_0 = arith.constant 0 : i32
    %c0_i32_1 = arith.constant 0 : i32
    return %c0_i32, %c0_i32_0 : i32, i32
  }
  func.func @transform_4(%arg0: i32) -> (i32, i32, i32) {
    %c0_i32 = arith.constant 0 : i32
    %c0_i32_0 = arith.constant 0 : i32
    %c0_i32_1 = arith.constant 0 : i32
    %c0_i32_2 = arith.constant 0 : i32
    return %c0_i32, %c0_i32_0, %c0_i32_1 : i32, i32, i32
  }
  func.func @transform_5(%arg0: i32) -> (i32, i32) {
    %c0_i32 = arith.constant 0 : i32
    %c0_i32_0 = arith.constant 0 : i32
    %c0_i32_1 = arith.constant 0 : i32
    return %c0_i32, %c0_i32_0 : i32, i32
  }
  func.func @transform_6(%arg0: i32) -> (i32, i32) {
    %c0_i32 = arith.constant 0 : i32
    %c0_i32_0 = arith.constant 0 : i32
    %c0_i32_1 = arith.constant 0 : i32
    return %c0_i32, %c0_i32_0 : i32, i32
  }
  func.func @transform_7(%arg0: i32) -> (i32, i32, i32) {
    %c0_i32 = arith.constant 0 : i32
    %c0_i32_0 = arith.constant 0 : i32
    %c0_i32_1 = arith.constant 0 : i32
    %c0_i32_2 = arith.constant 0 : i32
    return %c0_i32, %c0_i32_0, %c0_i32_1 : i32, i32, i32
  }
  func.func @transform_8(%arg0: i32) -> (i32, i32) {
    %c0_i32 = arith.constant 0 : i32
    %c0_i32_0 = arith.constant 0 : i32
    %c0_i32_1 = arith.constant 0 : i32
    return %c0_i32, %c0_i32_0 : i32, i32
  }
  func.func @transform_9(%arg0: i32) -> (i32, i32, i32) {
    %c0_i32 = arith.constant 0 : i32
    %c0_i32_0 = arith.constant 0 : i32
    %c0_i32_1 = arith.constant 0 : i32
    %c0_i32_2 = arith.constant 0 : i32
    return %c0_i32, %c0_i32_0, %c0_i32_1 : i32, i32, i32
  }
  func.func @transform_10(%arg0: i32) -> (i32, i32) {
    %c0_i32 = arith.constant 0 : i32
    %c0_i32_0 = arith.constant 0 : i32
    %c0_i32_1 = arith.constant 0 : i32
    return %c0_i32, %c0_i32_0 : i32, i32
  }
  func.func @transform_11(%arg0: i32) -> (i32, i32, i32) {
    %c0_i32 = arith.constant 0 : i32
    %c0_i32_0 = arith.constant 0 : i32
    %c0_i32_1 = arith.constant 0 : i32
    return %arg0, %c0_i32, %c0_i32_0 : i32, i32, i32
  }
}

</mosaic_0001>

<bundles_post_ra>
// kernel: _forward_impl.1
= control target key start
LH: loop header
LB: loop body
LE: loop exit
PB: predicated region body
PF: predicated region fallthrough
CT: control target
= control target key end

     0   :  { %16 = vsyncpa [#allocation4], 0  ;;  %s6212_s0 = inlined_call_operand.vmem [shape: f32[2,36,384], index: 0, kind: input, shape index: {}]   ;;  %s6213_s1 = inlined_call_operand.vmem [shape: f32[4,36], index: 1, kind: input, shape index: {}]   ;;  %s6214_s2 = inlined_call_operand.vmem [shape: f32[4,1], index: 2, kind: input, shape index: {}]   ;;  %s6215_s3 = inlined_call_operand.vmem [shape: f32[4,36], index: 3, kind: input, shape index: {}]   ;;  %s6216_s4 = inlined_call_operand.vmem [shape: f32[9,4,4], index: 4, kind: input, shape index: {}]   ;;  %s6217_s5 = inlined_call_operand.vmem [shape: f32[4,1], index: 5, kind: input, shape index: {}]   ;;  %s6218_s6 = inlined_call_operand.vmem [shape: f32[1,384], index: 6, kind: input, shape index: {}]   ;;  %s6219_s7 = inlined_call_operand.hbm [shape: f32[4,384,10], index: 7, kind: input, shape index: {}]   ;;  %s6220_s8 = inlined_call_operand.vmem [shape: f32[1,10], index: 8, kind: input, shape index: {}]   ;;  %s6221_s9 = inlined_call_operand.hbm [shape: f32[4,384,10], index: 9, kind: input, shape index: {}]   ;;  %s6222_s10 = inlined_call_operand.vmem [shape: f32[1,10], index: 10, kind: input, shape index: {}]   ;;  %s6223_s11 = inlined_call_operand.hbm [shape: f32[2,1,10], index: 11, kind: output, shape index: {}]  }
   0x1   :  { %17 = vsyncpa [#allocation7], 0 }
   0x2   :  { %18 = vsyncpa [#allocation5], 0 }
   0x3   :  { %20 = vsyncpa [#allocation5 + $0x1], 0  ;;  %s5691_s17 = smov 0   ;;  %s5693_s18 = smov 0  }
   0x4   :  { %s5695_s19 = smov 0   ;;  %s5697_s20 = smov 0  }
   0x5 LB: > { %6232 = sst [smem:[#allocation12_spill]] %s5600_s17  ;;  %s5712_s21 = sadd.s32 4294967295, %s5612_s20   ;;  %s5612_s20 = sphi %s5697_s20, %s6250_s20   ;;  %s5608_s19 = sphi %s5695_s19, %s6252_s19   ;;  %s5604_s18 = sphi %s5693_s18, %s6254_s18   ;;  %s5600_s17 = sphi %s5691_s17, %s6253_s17  }
   0x6   : > { %6233 = sst [smem:[#allocation13_spill]] %s5608_s19  ;;  %s3992_s22 = sadd.s32 4294967294, %s5612_s20  }
   0x7   : > { %s5716_s23 = sadd.s32 1, %s5612_s20   ;;  %s269_s24 = sadd.s32 1, %s5608_s19 }
   0x8   : > { %6234 = sst [smem:[#allocation14_spill]] %s5716_s23  ;;  %s266_s25 = ssub.s32 %s5612_s20, %s5716_s23 }
   0x9   : > { %p279_p0 = scmp.ne.s32.totalorder %s5608_s19, %s5604_s18  ;;  %p267_p1 = scmp.eq.s32.totalorder %s266_s25, 0 }
   0xa   : > { %p280_p2 = scmp.eq.s32.totalorder %s5712_s21, 1  ;;  %p285_p3 = scmp.ne.s32.totalorder %s5604_s18, %s5600_s17 }
   0xb   : > { %p286_p4 = scmp.eq.s32.totalorder %s3992_s22, 1  ;;  %p3993_p7 = scmp.ge.s32.totalorder %s5612_s20, 1 }
   0xc   : > { %s5727_s26 = scalar_select %p267_p1, %s5608_s19, %s269_s24  }
   0xd   : > { %p5729_p5 = por %p280_p2, %p279_p0  ;;  %p5733_p6 = por %p286_p4, %p285_p3 }
   0xe   : > { %6235 = sst [smem:[#allocation15_spill]] %s5727_s26  ;;  %p293_p8 = scmp.lt.s32.totalorder %s5612_s20, 3 }
   0xf   : > { %s6236_s27 = scalar_select %p5729_p5, 1, 0 }
  0x10   : > { %s6237_s28 = scalar_select %p5733_p6, 1, 0 }
  0x11   : > { %p6225_p9 = scmp.eq.s32.totalorder %s5712_s21, 0  ;;  %p5740_p10 = pnand %p3993_p7, %p293_p8 }
  0x12   : > { %6238 = sst [smem:[#allocation16_spill]] %s6237_s28  ;;  %s5614_s30 = smov [#allocation3]  }
  0x13   : > { %s6239_s29 = scalar_select %p5740_p10, 1, 0 }
  0x14   : > { %s323_s12 = sshll.u32 %s5614_s30, 4  ;;  %p5412_p11 = pneg %p5740_p10  ;;  %s324_s12 = int_to_ptr.vmem [resolvable:$true] %s323_s12 }
  0x15   : > { %s5615_s14 = smov [#allocation6]   ;;  %s5486_s24 = scalar_lea.hbm %s6219_s7, 24576 }
  0x16   : > { %p5748_p12 = pnand %p6225_p9, %p5412_p11  ;;  %s339_s15 = sshll.u32 %s5615_s14, 4  ;;  %s5752_s15 = int_to_ptr.vmem [resolvable:$true] %s339_s15 }
  0x17   : > { %p5487_p13 = scmp.ne.s32.totalorder %s6219_s7, %s5486_s24  ;;  %p5493_p3 = scmp.lt.u32.totalorder %s5486_s24, %s6219_s7 }
  0x18   : > { %p5488_p0 = pneg %p5748_p12 }
  0x1a   : > { %p5489_p1 = pnand %p5488_p0, %p5487_p13 }
  0x1c   : > { %p5490_p2 = pneg %p5489_p1 }
  0x1e   : > { %p5495_p4 = pnand %p5493_p3, %p5490_p2 }
  0x20   : > { %5498 = shalt.err (!%p5495_p4)
}
  0x21   : > { %s5499_s14 = scalar_lea.vmem %s324_s12, 24576  ;;  %p5507_p9 = scmp.lt.s32.totalorder %s324_s12, %s324_s12 }
  0x22   : > { %p5500_p7 = scmp.ne.s32.totalorder %s324_s12, %s5499_s14  ;;  %p5508_p6 = scmp.lt.s32.totalorder %s5499_s14, %s5499_s14 }
  0x24   : > { %p5502_p8 = pnand %p5500_p7, %p5488_p0  ;;  %p5509_p5 = por %p5508_p6, %p5507_p9 }
  0x26   : > { %p5503_p11 = pneg %p5502_p8 }
  0x28   : > { %p5510_p10 = pnand %p5509_p5, %p5503_p11 }
  0x2a   : > { %5513 = shalt.err (!%p5510_p10)
}
  0x2b   : > { %s5616_s16 = smov 128   ;;  %s5617_s22 = smov 8  }
  0x2c   : > { %5415 = dma.hbm_to_vmem [thread:$0]  (!%p5748_p12), %s6219_s7, 24576, %s324_s12, [#allocation4], %s5616_s16, %s5616_s16, %s5617_s22  }
  0x2d   : > { %s5514_s30 = scalar_lea.hbm %s6221_s9, 24576 }
  0x2e   : > { %p5515_p13 = scmp.ne.s32.totalorder %s6221_s9, %s5514_s30  ;;  %p5521_p9 = scmp.lt.u32.totalorder %s5514_s30, %s6221_s9 }
  0x30   : > { %p5517_p5 = pnand %p5515_p13, %p5488_p0 }
  0x32   : > { %p5518_p6 = pneg %p5517_p5 }
  0x34   : > { %p5523_p10 = pnand %p5521_p9, %p5518_p6 }
  0x36   : > { %5526 = shalt.err (!%p5523_p10)
}
  0x37   : > { %s5527_s12 = scalar_lea.vmem %s5752_s15, 24576  ;;  %p5535_p4 = scmp.lt.s32.totalorder %s5752_s15, %s5752_s15 }
  0x38   : > { %p5528_p1 = scmp.ne.s32.totalorder %s5752_s15, %s5527_s12  ;;  %p5536_p7 = scmp.lt.s32.totalorder %s5527_s12, %s5527_s12 }
  0x3a   : > { %p5530_p2 = pnand %p5528_p1, %p5488_p0  ;;  %p5537_p8 = por %p5536_p7, %p5535_p4 }
  0x3c   : > { %p5531_p3 = pneg %p5530_p2 }
  0x3e   : > { %p5538_p11 = pnand %p5537_p8, %p5531_p3 }
  0x40   : > { %5541 = shalt.err (!%p5538_p11)
}
  0x41   : > { %5418 = dma.hbm_to_vmem [thread:$0]  (!%p5748_p12), %s6221_s9, 24576, %s5752_s15, [#allocation7], %s5616_s16, %s5616_s16, %s5617_s22  }
  0x42   : > { %p6241_p13 = scmp.ne.s32.totalorder %s6239_s29, 0 }
  0x43   : > { %p6242_p5 = scmp.eq.s32.totalorder (!%p6241_p13), %s5712_s21, 0 }
  0x44   : > { %366 = sbr.rel (%p6241_p13) target bundleno = 1385 (0x569), region = 64 }
  0x4b   : > { %5587 = dma.done.wait (%p6242_p5), [#allocation4], 24576   ;;  %p6243_p0 = pmov %p6242_p5 }
  0x4d   : > { %5589 = vsyncadd (%p6243_p0), [#allocation4], 4294942720  ;;  %p6244_p6 = pmov %p6243_p0 }
  0x4e   : > { %p6245_p9 = pmov %p6243_p0 }
  0x4f   : > { %5591 = dma.done.wait (%p6244_p6), [#allocation7], 24576  }
  0x50   : > { %5593 = vsyncadd (%p6245_p9), [#allocation7], 4294942720  ;;  %p409_p10 = scmp.lt.s32.totalorder %s5712_s21, 1  ;;  %v5618_v0 = vmov 0.0|0.0   ;;  %v5619_v1 = vmov 0.0   ;;  %vm5620_vm0 = vmmov 0   ;;  %v596_v27 = vlaneseq }
  0x51   : > { %4872 = vmatprep.subr.bf16.mxu1 %v5618_v0  ;;  %515 = vmatprep.mubr.f32.mxu0 %v5619_v1  ;;  %614 = vst [vmem:[#allocation2] sm:$0xff] %v5619_v1  ;;  %615 = vst [vmem:[#allocation2 + $0x8] sm:$0xff] %v5619_v1  ;;  %v5621_v2 = vmov 0   ;;  %v431_v21 = vld [vmem:[%s6214_s2] sm:$0xf]  ;;  %vm441_vm1 = vcmask 1043456  }
  0x52   : > { %616 = vst [vmem:[#allocation2 + $0x10] sm:$0xf] %v5619_v1  ;;  %s410_s28 = scalar_select %p409_p10, %s5712_s21, 1  ;;  %4523 = vmatprep.mubr.msk.f32.mxu1 %vm5620_vm0, %v5619_v1  ;;  %5476 = vset.pattern.permute.xlu0 %v5621_v2  ;;  %v430_v25 = vld [vmem:[%s6213_s1] sm:$0xf]  ;;  %vm437_vm2 = vcmask 293888  }
  0x53   : > { %5477 = vset.pattern.permute.xlu1 %v5621_v2  ;;  %434 = vperm.xlu0 %5476, %v431_v21   ;;  %v624_v26 = vld [vmem:[%s6215_s3] sm:$0xf]  ;;  %v597_v28 = vshrl.u32 %v596_v27, 7  ;;  %s5622_s17 = smov 19   ;;  %s5623_s23 = smov 18   ;;  %vm790_vm3 = vcmask 154624  }
  0x54   : > { %s5401_s29 = smul.u32 120, %s410_s28  ;;  %v429_v32 = vld [vmem:[%s6218_s6] sm:$0x7]  ;;  %s5624_s28 = smov 17   ;;  %vm794_vm4 = vcmask 31744   ;;  %vm964_vm5 = vcmask 146432  }
  0x55   : > { %v598_v29 = vsub.s32 0, %v597_v28  ;;  %v606_v30 = vsub.s32 2, %v597_v28  ;;  %v602_v33 = vsub.s32 1, %v597_v28  ;;  %s5626_s13 = smov 127   ;;  %s5627_s15 = smov 111   ;;  %vm1137_vm6 = vcmask 138240  }
  0x56   : > { %s5823_s16 = scalar_lea.vmem %s6212_s0, %s5401_s29  ;;  %s5625_s29 = smov 1   ;;  %v775_v62 = vld [vmem:[%s6216_s4] sm:$0xf]  ;;  %vm1310_vm7 = vcmask 7168   ;;  %vm1643_vm8 = vcmask 1039360   ;;  %vm1816_vm9 = vcmask 908288  }
  0x57   : > { %v415_v3 = vld [vmem:[%s5823_s16 + $0x8] sm:$0xff]  ;;  %v418_v4 = vld [vmem:[%s5823_s16 + $0x20] sm:$0xff]  ;;  %v417_v7 = vld [vmem:[%s5823_s16 + $0x18] sm:$0xff]  ;;  %v5874_v37 = vrot.slane %v429_v32, %v598_v29  ;;  %v5876_v40 = vrot.slane %v429_v32, %v606_v30  ;;  %v5878_v43 = vrot.slane %v429_v32, %v602_v33  ;;  %s5629_s22 = smov 109   ;;  %vm1989_vm10 = vcmask 900096   ;;  %p6246_p1 = scmp.ne.s32.totalorder %s6236_s27, 0 }
  0x58   : > { %v414_v5 = vld [vmem:[%s5823_s16] sm:$0xff]  ;;  %v4864_v6 = vpack.c.bf16 %v418_v4, %v415_v3  ;;  %v416_v8 = vld [vmem:[%s5823_s16 + $0x10] sm:$0xff]  ;;  %v419_v9 = vld [vmem:[%s5823_s16 + $0x28] sm:$0xff]  ;;  %vm2162_vm11 = vcmask 891904   ;;  %vm3887_vm12 = vcmask 73728  }
  0x59   : > { %v4866_v10 = vpack.c.bf16 %v417_v7, %v414_v5  ;;  %v4873_v11 = vpack.c.bf16 %v419_v9, %v416_v8  ;;  %v421_v12 = vld [vmem:[%s5823_s16 + $0x38] sm:$0xff]  ;;  %v424_v13 = vld [vmem:[%s5823_s16 + $0x50] sm:$0xff]  ;;  %v423_v16 = vld [vmem:[%s5823_s16 + $0x48] sm:$0xff] }
  0x5a   : > { %v420_v14 = vld [vmem:[%s5823_s16 + $0x30] sm:$0xff]  ;;  %4865 = vmatprep.subr.bf16.mxu0 %v4864_v6  ;;  %v4868_v15 = vpack.c.bf16 %v424_v13, %v421_v12  ;;  %v422_v17 = vld [vmem:[%s5823_s16 + $0x40] sm:$0xff]  ;;  %v425_v18 = vld [vmem:[%s5823_s16 + $0x58] sm:$0xff] }
  0x5b   : > { %4867 = vmatpush1.bf16.msra.mxu0 %v4866_v10  ;;  %4874 = vmatpush3.bf16.msra.mxu1 %v4873_v11  ;;  %v4870_v19 = vpack.c.bf16 %v423_v16, %v420_v14  ;;  %v4876_v20 = vpack.c.bf16 %v425_v18, %v422_v17  ;;  %v427_v22 = vld [vmem:[%s5823_s16 + $0x68] sm:$0xf]  ;;  %v426_v23 = vld [vmem:[%s5823_s16 + $0x60] sm:$0xf]  ;;  %v428_v24 = vld [vmem:[%s5823_s16 + $0x70] sm:$0xf] }
  0x5c   : > { %4869 = vmatprep.subr.bf16.mxu0 %v4868_v15  ;;  %4875 = vmatprep.subr.bf16.mxu1 %v5618_v0  ;;  %s5628_s16 = smov 110   ;;  %v4016_v8 = vld [vmem:[%s6216_s4 + $0x4] sm:$0xf]  ;;  %v4022_v16 = vld [vmem:[%s6216_s4 + $0x8] sm:$0xf] }
  0x5d   : > { %v4034_v33 = vld [vmem:[%s6216_s4 + $0x10] sm:$0xf] }
  0x5f   : > { %4871 = vmatpush1.bf16.msra.mxu0 %v4870_v19  ;;  %4877 = vmatpush3.bf16.msra.mxu1 %v4876_v20 }
  0x60   : > { %4001 = vmatprep.subr.msk.mxu0 %vm441_vm1, %v427_v22  ;;  %4521 = vmatprep.subr.mxu1 %v5619_v1 }
  0x63   : > { %4002 = vmatpush1.msk.msra.mxu0 %vm441_vm1, %v426_v23  ;;  %4522 = vmatpush3.msk.msra.mxu1 %vm441_vm1, %v428_v24 }
  0x64   : > { %4003 = vmatmul.mubr.msk.f32.vlgmr.msra.gmra.mrb[0].mxu0 %vm437_vm2, %v430_v25  ;;  %4524 = vmatmul.mubr.msk.f32.vlgmr.msra.gmra.mrb[0].mxu1 %vm437_vm2, %v430_v25  ;;  %v4028_v25 = vld [vmem:[%s6216_s4 + $0xc] sm:$0xf] }
  0x65   : > { %4879 = vmatprep.subr.bf16.mxu0 %v4864_v6  ;;  %4886 = vmatprep.subr.bf16.mxu1 %v5618_v0 }
  0x66   : > { %4881 = vmatpush1.bf16.msra.mxu0 %v4866_v10  ;;  %4888 = vmatpush3.bf16.msra.mxu1 %v4873_v11 }
  0x67   : > { %4883 = vmatprep.subr.bf16.mxu0 %v4868_v15  ;;  %698 = vmatprep.mubr.f32.mxu0 %v5619_v1 }
  0x68   : > { %4889 = vmatprep.subr.bf16.mxu1 %v5618_v0  ;;  %4536 = vmatprep.mubr.msk.f32.mxu1 %vm5620_vm0, %v5619_v1 }
  0x6a   : > { %4885 = vmatpush1.bf16.msra.mxu0 %v4870_v19  ;;  %4891 = vmatpush3.bf16.msra.mxu1 %v4876_v20 }
  0x6b   : > { %4006 = vmatprep.subr.msk.mxu0 %vm441_vm1, %v427_v22  ;;  %4534 = vmatprep.subr.mxu1 %v5619_v1  ;;  %v625_v22 = vld [vmem:[%s6217_s5] sm:$0xf] }
  0x6e   : > { %4007 = vmatpush1.msk.msra.mxu0 %vm441_vm1, %v426_v23  ;;  %4535 = vmatpush3.msk.msra.mxu1 %vm441_vm1, %v428_v24 }
  0x6f   : > { %4539 = vmatprep.subr.mxu1 %v5619_v1  ;;  %4008 = vmatmul.mubr.msk.f32.vlgmr.msra.gmra.mrb[2].mxu0 %vm437_vm2, %v624_v26 }
  0x70   : > { %4537 = vmatmul.mubr.msk.f32.vlgmr.msra.gmra.mrb[2].mxu1 %vm437_vm2, %v624_v26  ;;  %868 = vmatprep.mubr.f32.mxu0 %v5619_v1 }
  0x71   : > { %4541 = vmatprep.mubr.msk.f32.mxu1 %vm5620_vm0, %v5619_v1 }
  0xd2   : > { %v435_v31 = vpop.permute.xlu0 %434 }
 0x137   : > { %v517_v34 = vpop.f32.mrb[0].mxu0  ;;  %v588_v35 = vpop.f32.mrb[0].mxu1 }
 0x138   : > { %v518_v36 = vadd.f32 %v517_v34, %v435_v31  ;;  %v519_v38 = vpop.f32.mrb[1].mxu0  ;;  %v589_v39 = vadd.f32 %v588_v35, %v435_v31  ;;  %v4525_v41 = vpop.f32.mrb[1].mxu1 }
 0x139   : > { %v520_v42 = vadd.f32 %v519_v38, %v435_v31 }
 0x13a   : > { %v592_v44 = vmax.f32 %v518_v36, 0.0  ;;  %v594_v45 = vmax.f32 %v589_v39, 0.0 }
 0x13b   : > { %v593_v46 = vmax.f32 %v520_v42, 0.0 }
 0x13c   : > { %v5881_v47 = vmul.f32 %v5874_v37, %v592_v44  ;;  %v5884_v48 = vmul.f32 %v5876_v40, %v594_v45  ;;  %v4040_v44 = vld [vmem:[%s6216_s4 + $0x14] sm:$0xf] }
 0x13d   : > { %v5887_v49 = vmul.f32 %v5878_v43, %v593_v46 }
 0x13e   : > { %623 = vst [vmem:[#allocation2 + $0xc] sm:$0xf] %v5884_v48 }
 0x13f   : > { %v5892_v50 = vcombine.low %v5881_v47, %v5887_v49  ;;  %v5897_v55 = vcombine.low %v5887_v49, %v5887_v49 }
 0x141   : > { %622 = vst [vmem:[#allocation2 + $0x4] sm:$0xff] %v5892_v50 }
 0x145   : > { %v1630_v56 = vld [vmem:[#allocation2 + $0xc] sm:$0xff] }
 0x146   : > { %v1634_v57 = vcombine.high %v1630_v56, %v1630_v56  ;;  %v1470_v35 = vld [vmem:[#allocation2 + $0xc] sm:$0xf] }
 0x148   : > { %v777_v51 = vld [vmem:[#allocation2 + $0x8] sm:$0xff]  ;;  %v776_v52 = vld [vmem:[#allocation2] sm:$0xff] }
 0x149   : > { %786 = vrot.lane.b32.xlu1 %v777_v51, %s5622_s17  ;;  %v780_v53 = vcombine.high %v776_v52, %v776_v52  ;;  %v781_v54 = vcombine.high %v777_v51, %v777_v51 }
 0x14b   : > { %784 = vrot.lane.b32.xlu0 %v780_v53, %s5622_s17 }
 0x14d   : > { %782 = vrot.lane.b32.xlu1 %v776_v52, %s5622_s17 }
 0x14f   : > { %960 = vrot.lane.b32.xlu0 %v777_v51, %s5623_s23 }
 0x151   : > { %958 = vrot.lane.b32.xlu1 %v780_v53, %s5623_s23 }
 0x153   : > { %788 = vrot.lane.b32.xlu0 %v781_v54, %s5622_s17 }
 0x155   : > { %956 = vrot.lane.b32.xlu1 %v776_v52, %s5623_s23 }
 0x157   : > { %1133 = vrot.lane.b32.xlu0 %v777_v51, %s5624_s28 }
 0x159   : > { %1131 = vrot.lane.b32.xlu1 %v780_v53, %s5624_s28 }
 0x15b   : > { %962 = vrot.lane.b32.xlu0 %v781_v54, %s5623_s23 }
 0x15d   : > { %1129 = vrot.lane.b32.xlu1 %v776_v52, %s5624_s28 }
 0x15f   : > { %1135 = vrot.lane.b32.xlu0 %v781_v54, %s5624_s28  ;;  %s407_s28 = sand.u32 1, %s5604_s18  }
 0x160   : > { %s3903_s26 = scalar_lea.sflag [#allocation5], %s407_s28 }
 0x161   : > { %1304 = vrot.lane.b32.xlu1 %v780_v53, %s5625_s29 }
 0x163   : > { %1306 = vrot.lane.b32.xlu0 %v777_v51, %s5625_s29 }
 0x165   : > { %1302 = vrot.lane.b32.xlu1 %v776_v52, %s5625_s29 }
 0x167   : > { %1308 = vrot.lane.b32.xlu0 %v781_v54, %s5625_s29  ;;  %s4064_s29 = sshll.u32 %s5712_s21, 4  ;;  %s5630_s21 = smov [#allocation8]  }
 0x168   : > { %s6169_s19 = scalar_lea.hbm %s6223_s11, %s4064_s29  ;;  %s5546_s25 = sshll.u32 %s5630_s21, 4  ;;  %s5547_s25 = int_to_ptr.vmem [resolvable:$false] %s5546_s25 }
 0x169   : > { %1637 = vrot.lane.b32.xlu1 %v5897_v55, %s5626_s13  ;;  %s5548_s30 = scalar_lea.vmem %s5547_s25, 32 }
 0x16b   : > { %1639 = vrot.lane.b32.xlu0 %v1630_v56, %s5626_s13 }
 0x16d   : > { %1635 = vrot.lane.b32.xlu1 %v5892_v50, %s5626_s13 }
 0x16f   : > { %1641 = vrot.lane.b32.xlu0 %v1634_v57, %s5626_s13  ;;  %s408_s13 = scalar_lea.vmem [#allocation8], %s407_s28 }
 0x171   : > { %1810 = vrot.lane.b32.xlu1 %v5897_v55, %s5627_s15 }
 0x173   : > { %1812 = vrot.lane.b32.xlu0 %v1630_v56, %s5627_s15 }
 0x175   : > { %1808 = vrot.lane.b32.xlu1 %v5892_v50, %s5627_s15 }
 0x177   : > { %1814 = vrot.lane.b32.xlu0 %v1634_v57, %s5627_s15  ;;  %s3915_s15 = sshll.u32 %s408_s13, 4  ;;  %s6171_s15 = int_to_ptr.vmem [resolvable:$true] %s3915_s15 }
 0x178   : > { %s5542_s24 = scalar_lea.vmem %s6171_s15, 16  ;;  %p5549_p4 = scmp.lt.s32.totalorder %s6171_s15, %s5547_s25 }
 0x179   : > { %1983 = vrot.lane.b32.xlu1 %v5897_v55, %s5628_s16  ;;  %p5543_p12 = scmp.ne.s32.totalorder %s6171_s15, %s5542_s24  ;;  %p5550_p7 = scmp.lt.s32.totalorder %s5548_s30, %s5542_s24 }
 0x17b   : > { %1985 = vrot.lane.b32.xlu0 %v1630_v56, %s5628_s16  ;;  %p5544_p2 = pnand %p5543_p12, %p6246_p1  ;;  %p5551_p8 = por %p5550_p7, %p5549_p4 }
 0x17d   : > { %1981 = vrot.lane.b32.xlu1 %v5892_v50, %s5628_s16  ;;  %p5545_p3 = pneg %p5544_p2 }
 0x17f   : > { %1987 = vrot.lane.b32.xlu0 %v1634_v57, %s5628_s16  ;;  %p5552_p11 = pnand %p5551_p8, %p5545_p3 }
 0x181   : > { %2156 = vrot.lane.b32.xlu1 %v5897_v55, %s5629_s22 }
 0x183   : > { %2158 = vrot.lane.b32.xlu0 %v1630_v56, %s5629_s22 }
 0x185   : > { %2154 = vrot.lane.b32.xlu1 %v5892_v50, %s5629_s22 }
 0x187   : > { %2160 = vrot.lane.b32.xlu0 %v1634_v57, %s5629_s22 }
 0x189   : > { %628 = vperm.xlu1 %5477, %v625_v22  }
 0x1bb   : > { %v787_v58 = vpop.permute.xlu1 %786 }
 0x1bd   : > { %v785_v59 = vpop.permute.xlu0 %784 }
 0x1be   : > { %v792_v60 = vsel %vm790_vm3, %v785_v59, %v787_v58 }
 0x1bf   : > { %v783_v61 = vpop.permute.xlu1 %782  ;;  %4011 = vmatprep.subr.msk.mxu0 %vm441_vm1, %v792_v60 }
 0x1c0   : > { %v791_v63 = vsel %vm790_vm3, %v783_v61, %v785_v59  ;;  %v2342_v61 = vld [vmem:[#allocation3 + $0x80] sm:$0xff] }
 0x1c1   : > { %4012 = vmatpush1.msk.msra.mxu0 %vm441_vm1, %v791_v63  ;;  %v961_v2 = vpop.permute.xlu0 %960 }
 0x1c2   : > { %4013 = vmatmul.mubr.msk.f32.vlgmr.msra.gmra.mrb[2].mxu0 %vm794_vm4, %v775_v62 }
 0x1c3   : > { %v959_v3 = vpop.permute.xlu1 %958  ;;  %1041 = vmatprep.mubr.f32.mxu0 %v5619_v1 }
 0x1c4   : > { %v966_v4 = vsel %vm964_vm5, %v959_v3, %v961_v2 }
 0x1c5   : > { %4017 = vmatprep.subr.msk.mxu0 %vm441_vm1, %v966_v4  ;;  %v789_v5 = vpop.permute.xlu0 %788 }
 0x1c6   : > { %v793_v6 = vsel %vm790_vm3, %v787_v58, %v789_v5 }
 0x1c7   : > { %v957_v7 = vpop.permute.xlu1 %956  ;;  %4540 = vmatpush3.msk.msra.mxu1 %vm441_vm1, %v793_v6 }
 0x1c8   : > { %v965_v9 = vsel %vm964_vm5, %v957_v7, %v959_v3  ;;  %4542 = vmatmul.mubr.msk.f32.vlgmr.msra.gmra.mrb[2].mxu1 %vm794_vm4, %v775_v62  ;;  %4544 = vmatprep.subr.mxu1 %v5619_v1  ;;  %v2343_v62 = vld [vmem:[#allocation3 + $0x88] sm:$0xff]  ;;  %v2326_v7 = vld [vmem:[#allocation3] sm:$0xff] }
 0x1c9   : > { %4018 = vmatpush1.msk.msra.mxu0 %vm441_vm1, %v965_v9  ;;  %v1134_v10 = vpop.permute.xlu0 %1133  ;;  %4546 = vmatprep.mubr.msk.f32.mxu1 %vm5620_vm0, %v5619_v1  ;;  %v4052_v3 = vld [vmem:[%s6216_s4 + $0x1c] sm:$0xf]  ;;  %v4892_v6 = vpack.c.bf16 %v2343_v62, %v2342_v61  ;;  %v2366_v62 = vld [vmem:[#allocation3 + $0x140] sm:$0xff] }
 0x1ca   : > { %4019 = vmatmul.mubr.msk.f32.vlgmr.msra.gmra.mrb[2].mxu0 %vm794_vm4, %v4016_v8  ;;  %v2355_v61 = vld [vmem:[#allocation3 + $0xe8] sm:$0xff] }
 0x1cb   : > { %v1132_v11 = vpop.permute.xlu1 %1131  ;;  %1214 = vmatprep.mubr.f32.mxu0 %v5619_v1 }
 0x1cc   : > { %v1139_v12 = vsel %vm1137_vm6, %v1132_v11, %v1134_v10 }
 0x1cd   : > { %4023 = vmatprep.subr.msk.mxu0 %vm441_vm1, %v1139_v12  ;;  %v963_v13 = vpop.permute.xlu0 %962  ;;  %v4058_v12 = vld [vmem:[%s6216_s4 + $0x20] sm:$0xf] }
 0x1ce   : > { %v967_v14 = vsel %vm964_vm5, %v961_v2, %v963_v13 }
 0x1cf   : > { %v1130_v15 = vpop.permute.xlu1 %1129  ;;  %4545 = vmatpush3.msk.msra.mxu1 %vm441_vm1, %v967_v14 }
 0x1d0   : > { %v1138_v17 = vsel %vm1137_vm6, %v1130_v15, %v1132_v11  ;;  %4547 = vmatmul.mubr.msk.f32.vlgmr.msra.gmra.mrb[2].mxu1 %vm794_vm4, %v4016_v8  ;;  %4549 = vmatprep.subr.mxu1 %v5619_v1  ;;  %v2327_v8 = vld [vmem:[#allocation3 + $0x8] sm:$0xff]  ;;  %v2345_v11 = vld [vmem:[#allocation3 + $0x98] sm:$0xff] }
 0x1d1   : > { %4024 = vmatpush1.msk.msra.mxu0 %vm441_vm1, %v1138_v17  ;;  %v1136_v18 = vpop.permute.xlu0 %1135  ;;  %4551 = vmatprep.mubr.msk.f32.mxu1 %vm5620_vm0, %v5619_v1  ;;  %v4894_v13 = vpack.c.bf16 %v2327_v8, %v2326_v7  ;;  %v2329_v17 = vld [vmem:[#allocation3 + $0x18] sm:$0xff]  ;;  %v2356_v7 = vld [vmem:[#allocation3 + $0xf0] sm:$0xff] }
 0x1d2   : > { %v1140_v19 = vsel %vm1137_vm6, %v1134_v10, %v1136_v18  ;;  %4025 = vmatmul.mubr.msk.f32.vlgmr.msra.gmra.mrb[2].mxu0 %vm794_vm4, %v4022_v16  ;;  %v2344_v10 = vld [vmem:[#allocation3 + $0x90] sm:$0xff]  ;;  %v2346_v18 = vld [vmem:[#allocation3 + $0xa0] sm:$0xff]  ;;  %v2357_v8 = vld [vmem:[#allocation3 + $0xf8] sm:$0xff] }
 0x1d3   : > { %v1305_v20 = vpop.permute.xlu1 %1304  ;;  %4550 = vmatpush3.msk.msra.mxu1 %vm441_vm1, %v1140_v19  ;;  %1387 = vmatprep.mubr.f32.mxu0 %v5619_v1  ;;  %v4896_v15 = vpack.c.bf16 %v2345_v11, %v2344_v10  ;;  %v2347_v19 = vld [vmem:[#allocation3 + $0xa8] sm:$0xff]  ;;  %v2369_v10 = vld [vmem:[#allocation3 + $0x158] sm:$0xff] }
 0x1d4   : > { %4554 = vmatprep.subr.mxu1 %v5619_v1 }
 0x1d5   : > { %v1307_v21 = vpop.permute.xlu0 %1306 }
 0x1d6   : > { %v1312_v23 = vsel %vm1310_vm7, %v1305_v20, %v1307_v21 }
 0x1d7   : > { %v1303_v24 = vpop.permute.xlu1 %1302  ;;  %4029 = vmatprep.subr.msk.mxu0 %vm441_vm1, %v1312_v23  ;;  %v4900_v23 = vpack.c.bf16 %v2347_v19, %v2346_v18  ;;  %v2370_v18 = vld [vmem:[#allocation3 + $0x160] sm:$0xff]  ;;  %v2371_v19 = vld [vmem:[#allocation3 + $0x168] sm:$0xff] }
 0x1d8   : > { %v1311_v26 = vsel %vm1310_vm7, %v1303_v24, %v1305_v20  ;;  %4552 = vmatmul.mubr.msk.f32.vlgmr.msra.gmra.mrb[2].mxu1 %vm794_vm4, %v4022_v16  ;;  %v2328_v16 = vld [vmem:[#allocation3 + $0x10] sm:$0xff]  ;;  %v2358_v20 = vld [vmem:[#allocation3 + $0x100] sm:$0xff] }
 0x1d9   : > { %4030 = vmatpush1.msk.msra.mxu0 %vm441_vm1, %v1311_v26  ;;  %v1309_v27 = vpop.permute.xlu0 %1308  ;;  %4556 = vmatprep.mubr.msk.f32.mxu1 %vm5620_vm0, %v5619_v1  ;;  %v4898_v22 = vpack.c.bf16 %v2329_v17, %v2328_v16  ;;  %v2330_v24 = vld [vmem:[#allocation3 + $0x20] sm:$0xff]  ;;  %v2533_v17 = vld [vmem:[#allocation3 + $0x208] sm:$0xff] }
 0x1da   : > { %v1313_v28 = vsel %vm1310_vm7, %v1307_v21, %v1309_v27  ;;  %4031 = vmatmul.mubr.msk.f32.vlgmr.msra.gmra.mrb[2].mxu0 %vm794_vm4, %v4028_v25  ;;  %4035 = vmatprep.subr.msk.mxu0 %vm441_vm1, %v5897_v55  ;;  %v4046_v55 = vld [vmem:[%s6216_s4 + $0x18] sm:$0xf]  ;;  %v2359_v21 = vld [vmem:[#allocation3 + $0x108] sm:$0xff]  ;;  %v2348_v27 = vld [vmem:[#allocation3 + $0xb0] sm:$0xff] }
 0x1db   : > { %v1638_v29 = vpop.permute.xlu1 %1637  ;;  %4555 = vmatpush3.msk.msra.mxu1 %vm441_vm1, %v1313_v28  ;;  %4036 = vmatpush1.msk.msra.mxu0 %vm441_vm1, %v5892_v50  ;;  %v4925_v26 = vpack.c.bf16 %v2359_v21, %v2358_v20  ;;  %v2349_v28 = vld [vmem:[#allocation3 + $0xb8] sm:$0xff]  ;;  %v2532_v16 = vld [vmem:[#allocation3 + $0x200] sm:$0xff] }
 0x1dc   : > { %4559 = vmatprep.subr.mxu1 %v5619_v1  ;;  %1547 = vmatprep.mubr.f32.mxu0 %v5619_v1  ;;  %v4948_v21 = vpack.c.bf16 %v2533_v17, %v2532_v16  ;;  %v2545_v16 = vld [vmem:[#allocation3 + $0x268] sm:$0xff]  ;;  %v2556_v17 = vld [vmem:[#allocation3 + $0x2c0] sm:$0xff] }
 0x1dd   : > { %v1640_v30 = vpop.permute.xlu0 %1639 }
 0x1de   : > { %v1645_v31 = vsel %vm1643_vm8, %v1638_v29, %v1640_v30 }
 0x1df   : > { %v1636_v32 = vpop.permute.xlu1 %1635  ;;  %4041 = vmatprep.subr.msk.mxu0 %vm441_vm1, %v1645_v31 }
 0x1e0   : > { %v1644_v34 = vsel %vm1643_vm8, %v1636_v32, %v1638_v29  ;;  %4557 = vmatmul.mubr.msk.f32.vlgmr.msra.gmra.mrb[2].mxu1 %vm794_vm4, %v4028_v25  ;;  %v2331_v25 = vld [vmem:[#allocation3 + $0x28] sm:$0xff]  ;;  %v2360_v29 = vld [vmem:[#allocation3 + $0x110] sm:$0xff]  ;;  %v4904_v32 = vpack.c.bf16 %v2349_v28, %v2348_v27  ;;  %v2373_v28 = vld [vmem:[#allocation3 + $0x178] sm:$0xff] }
 0x1e1   : > { %4560 = vmatpush3.msk.msra.mxu1 %vm441_vm1, %v1470_v35  ;;  %v1642_v36 = vpop.permute.xlu0 %1641  ;;  %4561 = vmatprep.mubr.msk.f32.mxu1 %vm5620_vm0, %v5619_v1  ;;  %v4902_v31 = vpack.c.bf16 %v2331_v25, %v2330_v24  ;;  %v4943_v24 = vpack.c.bf16 %v2371_v19, %v2370_v18  ;;  %v2534_v25 = vld [vmem:[#allocation3 + $0x210] sm:$0xff]  ;;  %v2557_v18 = vld [vmem:[#allocation3 + $0x2c8] sm:$0xff] }
 0x1e2   : > { %4037 = vmatmul.mubr.msk.f32.vlgmr.msra.gmra.mrb[2].mxu0 %vm794_vm4, %v4034_v33  ;;  %4564 = vmatprep.subr.mxu1 %v5619_v1  ;;  %v1646_v45 = vsel %vm1643_vm8, %v1640_v30, %v1642_v36  ;;  %v2361_v30 = vld [vmem:[#allocation3 + $0x118] sm:$0xff]  ;;  %v2350_v36 = vld [vmem:[#allocation3 + $0xc0] sm:$0xff]  ;;  %v2372_v27 = vld [vmem:[#allocation3 + $0x170] sm:$0xff] }
 0x1e3   : > { %4042 = vmatpush1.msk.msra.mxu0 %vm441_vm1, %v1644_v34  ;;  %v1811_v38 = vpop.permute.xlu1 %1810  ;;  %1720 = vmatprep.mubr.f32.mxu0 %v5619_v1  ;;  %v2333_v34 = vld [vmem:[#allocation3 + $0x38] sm:$0xff]  ;;  %v4928_v35 = vpack.c.bf16 %v2361_v30, %v2360_v29 }
 0x1e5   : > { %v1813_v39 = vpop.permute.xlu0 %1812 }
 0x1e6   : > { %v1818_v41 = vsel %vm1816_vm9, %v1811_v38, %v1813_v39 }
 0x1e7   : > { %v1809_v42 = vpop.permute.xlu1 %1808  ;;  %4047 = vmatprep.subr.msk.mxu0 %vm441_vm1, %v1818_v41  ;;  %v2363_v41 = vld [vmem:[#allocation3 + $0x128] sm:$0xff] }
 0x1e8   : > { %v1817_v46 = vsel %vm1816_vm9, %v1809_v42, %v1811_v38  ;;  %4562 = vmatmul.mubr.msk.f32.vlgmr.msra.gmra.mrb[2].mxu1 %vm794_vm4, %v4034_v33  ;;  %v2332_v33 = vld [vmem:[#allocation3 + $0x30] sm:$0xff]  ;;  %v2351_v38 = vld [vmem:[#allocation3 + $0xc8] sm:$0xff] }
 0x1e9   : > { %4565 = vmatpush3.msk.msra.mxu1 %vm441_vm1, %v1646_v45  ;;  %v1815_v50 = vpop.permute.xlu0 %1814  ;;  %4566 = vmatprep.mubr.msk.f32.mxu1 %vm5620_vm0, %v5619_v1  ;;  %v4906_v42 = vpack.c.bf16 %v2333_v34, %v2332_v33  ;;  %v2334_v45 = vld [vmem:[#allocation3 + $0x40] sm:$0xff]  ;;  %v2565_v33 = vrot.slane %v5887_v49, 1  ;;  %v4946_v34 = vpack.c.bf16 %v2373_v28, %v2372_v27  ;;  %v2559_v27 = vld [vmem:[#allocation3 + $0x2d8] sm:$0xff] }
 0x1ea   : > { %4043 = vmatmul.mubr.msk.f32.vlgmr.msra.gmra.mrb[2].mxu0 %vm794_vm4, %v4040_v44  ;;  %4569 = vmatprep.subr.mxu1 %v5619_v1  ;;  %v1819_v56 = vsel %vm1816_vm9, %v1813_v39, %v1815_v50  ;;  %v2362_v39 = vld [vmem:[#allocation3 + $0x120] sm:$0xff] }
 0x1eb   : > { %4048 = vmatpush1.msk.msra.mxu0 %vm441_vm1, %v1817_v46  ;;  %v1984_v51 = vpop.permute.xlu1 %1983  ;;  %1893 = vmatprep.mubr.f32.mxu0 %v5619_v1  ;;  %v2335_v46 = vld [vmem:[#allocation3 + $0x48] sm:$0xff]  ;;  %v4931_v50 = vpack.c.bf16 %v2363_v41, %v2362_v39 }
 0x1ec   : > { %v2549_v39 = vld [vmem:[#allocation3 + $0x288] sm:$0xff] }
 0x1ed   : > { %v1986_v52 = vpop.permute.xlu0 %1985 }
 0x1ee   : > { %v1991_v53 = vsel %vm1989_vm10, %v1984_v51, %v1986_v52 }
 0x1ef   : > { %v1982_v54 = vpop.permute.xlu1 %1981  ;;  %4053 = vmatprep.subr.msk.mxu0 %vm441_vm1, %v1991_v53  ;;  %v2364_v53 = vld [vmem:[#allocation3 + $0x130] sm:$0xff] }
 0x1f0   : > { %v1990_v57 = vsel %vm1989_vm10, %v1982_v54, %v1984_v51  ;;  %4567 = vmatmul.mubr.msk.f32.vlgmr.msra.gmra.mrb[2].mxu1 %vm794_vm4, %v4040_v44  ;;  %v4908_v44 = vpack.c.bf16 %v2351_v38, %v2350_v36  ;;  %v2352_v51 = vld [vmem:[#allocation3 + $0xd0] sm:$0xff]  ;;  %v2365_v54 = vld [vmem:[#allocation3 + $0x138] sm:$0xff]  ;;  %v2537_v36 = vld [vmem:[#allocation3 + $0x228] sm:$0xff] }
 0x1f1   : > { %4570 = vmatpush3.msk.msra.mxu1 %vm441_vm1, %v1819_v56  ;;  %v1988_v58 = vpop.permute.xlu0 %1987  ;;  %4571 = vmatprep.mubr.msk.f32.mxu1 %vm5620_vm0, %v5619_v1  ;;  %v2548_v38 = vld [vmem:[#allocation3 + $0x280] sm:$0xff] }
 0x1f2   : > { %4049 = vmatmul.mubr.msk.f32.vlgmr.msra.gmra.mrb[2].mxu0 %vm794_vm4, %v4046_v55  ;;  %4574 = vmatprep.subr.mxu1 %v5619_v1  ;;  %v1992_v4 = vsel %vm1989_vm10, %v1986_v52, %v1988_v58  ;;  %v2353_v52 = vld [vmem:[#allocation3 + $0xd8] sm:$0xff] }
 0x1f3   : > { %4054 = vmatpush1.msk.msra.mxu0 %vm441_vm1, %v1990_v57  ;;  %v2157_v59 = vpop.permute.xlu1 %2156  ;;  %2066 = vmatprep.mubr.f32.mxu0 %v5619_v1  ;;  %v4912_v56 = vpack.c.bf16 %v2353_v52, %v2352_v51  ;;  %v2336_v57 = vld [vmem:[#allocation3 + $0x50] sm:$0xff]  ;;  %v2337_v58 = vld [vmem:[#allocation3 + $0x58] sm:$0xff] }
 0x1f4   : > { %v2539_v51 = vld [vmem:[#allocation3 + $0x238] sm:$0xff]  ;;  %v2550_v52 = vld [vmem:[#allocation3 + $0x290] sm:$0xff] }
 0x1f5   : > { %v2159_v60 = vpop.permute.xlu0 %2158 }
 0x1f6   : > { %v2164_v63 = vsel %vm2162_vm11, %v2157_v59, %v2159_v60 }
 0x1f7   : > { %v2155_v2 = vpop.permute.xlu1 %2154  ;;  %4059 = vmatprep.subr.msk.mxu0 %vm441_vm1, %v2164_v63  ;;  %v2367_v63 = vld [vmem:[#allocation3 + $0x148] sm:$0xff] }
 0x1f8   : > { %v2163_v5 = vsel %vm2162_vm11, %v2155_v2, %v2157_v59  ;;  %4572 = vmatmul.mubr.msk.f32.vlgmr.msra.gmra.mrb[2].mxu1 %vm794_vm4, %v4046_v55  ;;  %v4910_v55 = vpack.c.bf16 %v2335_v46, %v2334_v45  ;;  %v4934_v59 = vpack.c.bf16 %v2365_v54, %v2364_v53  ;;  %v4914_v2 = vpack.c.bf16 %v2337_v58, %v2336_v57  ;;  %v2521_v45 = vld [vmem:[#allocation3 + $0x1a8] sm:$0xff]  ;;  %v2551_v53 = vld [vmem:[#allocation3 + $0x298] sm:$0xff] }
 0x1f9   : > { %4575 = vmatpush3.msk.msra.mxu1 %vm441_vm1, %v1992_v4  ;;  %4576 = vmatprep.mubr.msk.f32.mxu1 %vm5620_vm0, %v5619_v1  ;;  %v2161_v9 = vpop.permute.xlu0 %2160  ;;  %v2338_v4 = vld [vmem:[#allocation3 + $0x60] sm:$0xff]  ;;  %v4981_v46 = vpack.c.bf16 %v2549_v39, %v2548_v38  ;;  %v2523_v57 = vld [vmem:[#allocation3 + $0x1b8] sm:$0xff]  ;;  %v4984_v58 = vpack.c.bf16 %v2551_v53, %v2550_v52  ;;  %v2564_v53 = vrot.slane %v5881_v47, 1 }
 0x1fa   : > { %4055 = vmatmul.mubr.msk.f32.vlgmr.msra.gmra.mrb[2].mxu0 %vm794_vm4, %v4052_v3  ;;  %4579 = vmatprep.subr.mxu1 %v5619_v1  ;;  %v2165_v14 = vsel %vm2162_vm11, %v2159_v60, %v2161_v9  ;;  %v2354_v60 = vld [vmem:[#allocation3 + $0xe0] sm:$0xff]  ;;  %v2368_v9 = vld [vmem:[#allocation3 + $0x150] sm:$0xff] }
 0x1fb   : > { %4060 = vmatpush1.msk.msra.mxu0 %vm441_vm1, %v2163_v5  ;;  %2239 = vmatprep.mubr.f32.mxu0 %v5619_v1  ;;  %v2339_v5 = vld [vmem:[#allocation3 + $0x68] sm:$0xff] }
 0x1fc   : > { %4893 = vmatprep.subr.bf16.mxu0 %v4892_v6  ;;  %v4937_v6 = vpack.c.bf16 %v2367_v63, %v2366_v62  ;;  %v4918_v11 = vpack.c.bf16 %v2339_v5, %v2338_v4  ;;  %v2553_v62 = vld [vmem:[#allocation3 + $0x2a8] sm:$0xff] }
 0x1fd   : > { %v2525_v4 = vld [vmem:[#allocation3 + $0x1c8] sm:$0xff] }
 0x200   : > { %4577 = vmatmul.mubr.msk.f32.vlgmr.msra.gmra.mrb[2].mxu1 %vm794_vm4, %v4052_v3  ;;  %v4916_v3 = vpack.c.bf16 %v2355_v61, %v2354_v60  ;;  %v2541_v60 = vld [vmem:[#allocation3 + $0x248] sm:$0xff]  ;;  %v2552_v61 = vld [vmem:[#allocation3 + $0x2a0] sm:$0xff] }
 0x201   : > { %4580 = vmatpush3.msk.msra.mxu1 %vm441_vm1, %v2165_v14  ;;  %4581 = vmatprep.mubr.msk.f32.mxu1 %vm5620_vm0, %v5619_v1  ;;  %v2341_v14 = vld [vmem:[#allocation3 + $0x78] sm:$0xff]  ;;  %v4987_v5 = vpack.c.bf16 %v2553_v62, %v2552_v61  ;;  %v2744_v61 = vld [vmem:[#allocation3 + $0x400] sm:$0xff]  ;;  %v2745_v62 = vld [vmem:[#allocation3 + $0x408] sm:$0xff] }
 0x202   : > { %4061 = vmatmul.mubr.msk.f32.vlgmr.msra.gmra.mrb[2].mxu0 %vm794_vm4, %v4058_v12  ;;  %4924 = vmatprep.subr.bf16.mxu1 %v5618_v0 }
 0x203   : > { %4895 = vmatpush3.bf16.msra.mxu0 %v4894_v13  ;;  %2438 = vmatprep.mubr.f32.mxu0 %v5887_v49  ;;  %v2340_v13 = vld [vmem:[#allocation3 + $0x70] sm:$0xff] }
 0x204   : > { %4897 = vmatprep.subr.bf16.mxu0 %v4896_v15  ;;  %v4940_v15 = vpack.c.bf16 %v2369_v10, %v2368_v9  ;;  %v4922_v20 = vpack.c.bf16 %v2341_v14, %v2340_v13  ;;  %v2555_v9 = vld [vmem:[#allocation3 + $0x2b8] sm:$0xff] }
 0x205   : > { %v2527_v13 = vld [vmem:[#allocation3 + $0x1d8] sm:$0xff] }
 0x207   : > { %4899 = vmatpush3.bf16.msra.mxu0 %v4898_v22  ;;  %v2516_v22 = vld [vmem:[#allocation3 + $0x180] sm:$0xff] }
 0x208   : > { %4582 = vmatmul.mubr.msk.f32.vlgmr.msra.gmra.mrb[2].mxu1 %vm794_vm4, %v4058_v12  ;;  %4901 = vmatprep.subr.bf16.mxu0 %v4900_v23  ;;  %v4920_v12 = vpack.c.bf16 %v2357_v8, %v2356_v7  ;;  %v2517_v23 = vld [vmem:[#allocation3 + $0x188] sm:$0xff]  ;;  %v2543_v7 = vld [vmem:[#allocation3 + $0x258] sm:$0xff]  ;;  %v2554_v8 = vld [vmem:[#allocation3 + $0x2b0] sm:$0xff] }
 0x209   : > { %4926 = vmatpush3.bf16.msra.mxu1 %v4925_v26  ;;  %4616 = vmatprep.mubr.msk.f32.mxu1 %vm5620_vm0, %v5619_v1  ;;  %v2535_v26 = vld [vmem:[#allocation3 + $0x218] sm:$0xff]  ;;  %v4950_v29 = vpack.c.bf16 %v2517_v23, %v2516_v22  ;;  %v4990_v14 = vpack.c.bf16 %v2555_v9, %v2554_v8  ;;  %v2529_v22 = vld [vmem:[#allocation3 + $0x1e8] sm:$0xff]  ;;  %v4993_v23 = vpack.c.bf16 %v2557_v18, %v2556_v17  ;;  %v2566_v8 = vrot.slane %v5884_v48, 1  ;;  %v2746_v9 = vld [vmem:[#allocation3 + $0x410] sm:$0xff] }
 0x20a   : > { %4927 = vmatprep.subr.bf16.mxu1 %v5618_v0  ;;  %v4952_v30 = vpack.c.bf16 %v2535_v26, %v2534_v25  ;;  %v2547_v25 = vld [vmem:[#allocation3 + $0x278] sm:$0xff]  ;;  %v2558_v26 = vld [vmem:[#allocation3 + $0x2d0] sm:$0xff]  ;;  %v2737_v17 = vld [vmem:[#allocation3 + $0x3c8] sm:$0xff] }
 0x20b   : > { %4903 = vmatpush3.bf16.msra.mxu0 %v4902_v31  ;;  %v2518_v31 = vld [vmem:[#allocation3 + $0x190] sm:$0xff]  ;;  %v2748_v18 = vld [vmem:[#allocation3 + $0x420] sm:$0xff] }
 0x20c   : > { %4905 = vmatprep.subr.bf16.mxu0 %v4904_v32  ;;  %v2519_v32 = vld [vmem:[#allocation3 + $0x198] sm:$0xff] }
 0x20d   : > { %4929 = vmatpush3.bf16.msra.mxu1 %v4928_v35  ;;  %v2536_v35 = vld [vmem:[#allocation3 + $0x220] sm:$0xff]  ;;  %v4954_v41 = vpack.c.bf16 %v2519_v32, %v2518_v31  ;;  %v2531_v31 = vld [vmem:[#allocation3 + $0x1f8] sm:$0xff]  ;;  %v4996_v32 = vpack.c.bf16 %v2559_v27, %v2558_v26  ;;  %v2750_v27 = vld [vmem:[#allocation3 + $0x430] sm:$0xff] }
 0x20e   : > { %4930 = vmatprep.subr.bf16.mxu1 %v5618_v0  ;;  %v2739_v26 = vld [vmem:[#allocation3 + $0x3d8] sm:$0xff] }
 0x20f   : > { %4907 = vmatpush3.bf16.msra.mxu0 %v4906_v42  ;;  %v4956_v42 = vpack.c.bf16 %v2537_v36, %v2536_v35  ;;  %v2560_v35 = vld [vmem:[#allocation3 + $0x2e0] sm:$0xff]  ;;  %v2561_v36 = vld [vmem:[#allocation3 + $0x2e8] sm:$0xff] }
 0x210   : > { %4909 = vmatprep.subr.bf16.mxu0 %v4908_v44  ;;  %v2520_v44 = vld [vmem:[#allocation3 + $0x1a0] sm:$0xff] }
 0x211   : > { %4932 = vmatpush3.bf16.msra.mxu1 %v4931_v50  ;;  %v2538_v50 = vld [vmem:[#allocation3 + $0x230] sm:$0xff]  ;;  %v4958_v54 = vpack.c.bf16 %v2521_v45, %v2520_v44  ;;  %v4999_v44 = vpack.c.bf16 %v2561_v36, %v2560_v35  ;;  %v2741_v35 = vld [vmem:[#allocation3 + $0x3e8] sm:$0xff]  ;;  %v2752_v36 = vld [vmem:[#allocation3 + $0x440] sm:$0xff] }
 0x212   : > { %4933 = vmatprep.subr.bf16.mxu1 %v5618_v0  ;;  %v2730_v45 = vld [vmem:[#allocation3 + $0x390] sm:$0xff] }
 0x213   : > { %4911 = vmatpush3.bf16.msra.mxu0 %v4910_v55  ;;  %v4960_v55 = vpack.c.bf16 %v2539_v51, %v2538_v50  ;;  %v2562_v50 = vld [vmem:[#allocation3 + $0x2f0] sm:$0xff]  ;;  %v2563_v51 = vld [vmem:[#allocation3 + $0x2f8] sm:$0xff] }
 0x214   : > { %4913 = vmatprep.subr.bf16.mxu0 %v4912_v56  ;;  %v2522_v56 = vld [vmem:[#allocation3 + $0x1b0] sm:$0xff] }
 0x215   : > { %4935 = vmatpush3.bf16.msra.mxu1 %v4934_v59  ;;  %v2540_v59 = vld [vmem:[#allocation3 + $0x240] sm:$0xff]  ;;  %v4962_v63 = vpack.c.bf16 %v2523_v57, %v2522_v56  ;;  %v2715_v56 = vld [vmem:[#allocation3 + $0x318] sm:$0xff]  ;;  %v2761_v57 = vrot.slane %v5887_v49, 2 }
 0x216   : > { %4936 = vmatprep.subr.bf16.mxu1 %v5618_v0 }
 0x217   : > { %4915 = vmatpush3.bf16.msra.mxu0 %v4914_v2  ;;  %v4964_v2 = vpack.c.bf16 %v2541_v60, %v2540_v59  ;;  %v2732_v59 = vld [vmem:[#allocation3 + $0x3a0] sm:$0xff]  ;;  %v2733_v60 = vld [vmem:[#allocation3 + $0x3a8] sm:$0xff] }
 0x218   : > { %4917 = vmatprep.subr.bf16.mxu0 %v4916_v3  ;;  %v2524_v3 = vld [vmem:[#allocation3 + $0x1c0] sm:$0xff] }
 0x219   : > { %4938 = vmatpush3.bf16.msra.mxu1 %v4937_v6  ;;  %v2542_v6 = vld [vmem:[#allocation3 + $0x250] sm:$0xff]  ;;  %v4966_v10 = vpack.c.bf16 %v2525_v4, %v2524_v3  ;;  %v2716_v3 = vld [vmem:[#allocation3 + $0x320] sm:$0xff]  ;;  %v2717_v4 = vld [vmem:[#allocation3 + $0x328] sm:$0xff] }
 0x21a   : > { %4939 = vmatprep.subr.bf16.mxu1 %v5618_v0 }
 0x21b   : > { %4919 = vmatpush3.bf16.msra.mxu0 %v4918_v11  ;;  %v4968_v11 = vpack.c.bf16 %v2543_v7, %v2542_v6  ;;  %v2734_v6 = vld [vmem:[#allocation3 + $0x3b0] sm:$0xff]  ;;  %v2735_v7 = vld [vmem:[#allocation3 + $0x3b8] sm:$0xff] }
 0x21c   : > { %4921 = vmatprep.subr.bf16.mxu0 %v4920_v12  ;;  %v2526_v12 = vld [vmem:[#allocation3 + $0x1d0] sm:$0xff] }
 0x21d   : > { %4941 = vmatpush3.bf16.msra.mxu1 %v4940_v15  ;;  %v2544_v15 = vld [vmem:[#allocation3 + $0x260] sm:$0xff]  ;;  %v4970_v19 = vpack.c.bf16 %v2527_v13, %v2526_v12  ;;  %v5016_v12 = vpack.c.bf16 %v2735_v7, %v2734_v6  ;;  %v2718_v13 = vld [vmem:[#allocation3 + $0x330] sm:$0xff]  ;;  %v2927_v6 = vld [vmem:[#allocation3 + $0x518] sm:$0xff] }
 0x21e   : > { %4942 = vmatprep.subr.bf16.mxu1 %v5618_v0  ;;  %v2758_v7 = vld [vmem:[#allocation3 + $0x470] sm:$0xff] }
 0x21f   : > { %4923 = vmatpush3.bf16.msra.mxu0 %v4922_v20  ;;  %v4972_v20 = vpack.c.bf16 %v2545_v16, %v2544_v15  ;;  %v2736_v16 = vld [vmem:[#allocation3 + $0x3c0] sm:$0xff] }
 0x220   : > { %4949 = vmatprep.subr.bf16.mxu0 %v4948_v21  ;;  %v2528_v21 = vld [vmem:[#allocation3 + $0x1e0] sm:$0xff] }
 0x221   : > { %4944 = vmatpush3.bf16.msra.mxu1 %v4943_v24  ;;  %v2546_v24 = vld [vmem:[#allocation3 + $0x270] sm:$0xff]  ;;  %v4974_v28 = vpack.c.bf16 %v2529_v22, %v2528_v21  ;;  %v5020_v21 = vpack.c.bf16 %v2737_v17, %v2736_v16  ;;  %v2720_v22 = vld [vmem:[#allocation3 + $0x340] sm:$0xff]  ;;  %v2929_v17 = vld [vmem:[#allocation3 + $0x528] sm:$0xff] }
 0x222   : > { %2439 = vmatmul.mubr.f32.vlgmr.msra.gmra.mrb[4].mxu0 %v5881_v47  ;;  %4945 = vmatprep.subr.bf16.mxu1 %v5618_v0  ;;  %v2928_v16 = vld [vmem:[#allocation3 + $0x520] sm:$0xff] }
 0x223   : > { %4951 = vmatpush3.bf16.msra.mxu0 %v4950_v29  ;;  %2634 = vmatprep.mubr.f32.mxu0 %v2565_v33  ;;  %v4976_v29 = vpack.c.bf16 %v2547_v25, %v2546_v24  ;;  %v2728_v33 = vld [vmem:[#allocation3 + $0x380] sm:$0xff]  ;;  %v2738_v25 = vld [vmem:[#allocation3 + $0x3d0] sm:$0xff] }
 0x224   : > { %4953 = vmatprep.subr.bf16.mxu0 %v4952_v30  ;;  %v2530_v30 = vld [vmem:[#allocation3 + $0x1f0] sm:$0xff] }
 0x225   : > { %4947 = vmatpush3.bf16.msra.mxu1 %v4946_v34  ;;  %v2729_v34 = vld [vmem:[#allocation3 + $0x388] sm:$0xff]  ;;  %v4978_v38 = vpack.c.bf16 %v2531_v31, %v2530_v30  ;;  %v5024_v30 = vpack.c.bf16 %v2739_v26, %v2738_v25  ;;  %v2722_v31 = vld [vmem:[#allocation3 + $0x350] sm:$0xff]  ;;  %v2931_v26 = vld [vmem:[#allocation3 + $0x538] sm:$0xff] }
 0x226   : > { %4980 = vmatprep.subr.bf16.mxu1 %v5618_v0  ;;  %v5004_v39 = vpack.c.bf16 %v2729_v34, %v2728_v33  ;;  %v2740_v34 = vld [vmem:[#allocation3 + $0x3e0] sm:$0xff]  ;;  %v2930_v25 = vld [vmem:[#allocation3 + $0x530] sm:$0xff] }
 0x227   : > { %4955 = vmatpush3.bf16.msra.mxu0 %v4954_v41  ;;  %v2712_v41 = vld [vmem:[#allocation3 + $0x300] sm:$0xff] }
 0x228   : > { %4617 = vmatmul.mubr.f32.vlgmr.msra.gmra.mrb[4].mxu1 %v5884_v48  ;;  %4957 = vmatprep.subr.bf16.mxu0 %v4956_v42  ;;  %v2713_v42 = vld [vmem:[#allocation3 + $0x308] sm:$0xff] }
 0x229   : > { %4982 = vmatpush3.bf16.msra.mxu1 %v4981_v46  ;;  %4651 = vmatprep.mubr.msk.f32.mxu1 %vm5620_vm0, %v5619_v1  ;;  %v2731_v46 = vld [vmem:[#allocation3 + $0x398] sm:$0xff]  ;;  %v5006_v52 = vpack.c.bf16 %v2713_v42, %v2712_v41  ;;  %v5028_v41 = vpack.c.bf16 %v2741_v35, %v2740_v34  ;;  %v2724_v42 = vld [vmem:[#allocation3 + $0x360] sm:$0xff]  ;;  %v2933_v35 = vld [vmem:[#allocation3 + $0x548] sm:$0xff] }
 0x22a   : > { %4983 = vmatprep.subr.bf16.mxu1 %v5618_v0  ;;  %v2932_v34 = vld [vmem:[#allocation3 + $0x540] sm:$0xff] }
 0x22b   : > { %4959 = vmatpush3.bf16.msra.mxu0 %v4958_v54  ;;  %v5008_v54 = vpack.c.bf16 %v2731_v46, %v2730_v45  ;;  %v2742_v46 = vld [vmem:[#allocation3 + $0x3f0] sm:$0xff] }
 0x22c   : > { %4961 = vmatprep.subr.bf16.mxu0 %v4960_v55  ;;  %v2714_v55 = vld [vmem:[#allocation3 + $0x310] sm:$0xff] }
 0x22d   : > { %4985 = vmatpush3.bf16.msra.mxu1 %v4984_v58  ;;  %v5002_v58 = vpack.c.bf16 %v2563_v51, %v2562_v50  ;;  %v2743_v50 = vld [vmem:[#allocation3 + $0x3f8] sm:$0xff]  ;;  %v2754_v51 = vld [vmem:[#allocation3 + $0x450] sm:$0xff] }
 0x22e   : > { %4986 = vmatprep.subr.bf16.mxu1 %v5618_v0 }
 0x22f   : > { %4963 = vmatpush3.bf16.msra.mxu0 %v4962_v63  ;;  %v5010_v63 = vpack.c.bf16 %v2715_v56, %v2714_v55  ;;  %v2726_v55 = vld [vmem:[#allocation3 + $0x370] sm:$0xff]  ;;  %v2727_v56 = vld [vmem:[#allocation3 + $0x378] sm:$0xff] }
 0x230   : > { %4965 = vmatprep.subr.bf16.mxu0 %v4964_v2  ;;  %v5012_v2 = vpack.c.bf16 %v2733_v60, %v2732_v59  ;;  %v2925_v59 = vld [vmem:[#allocation3 + $0x508] sm:$0xff]  ;;  %v2756_v60 = vld [vmem:[#allocation3 + $0x460] sm:$0xff] }
 0x231   : > { %4988 = vmatpush3.bf16.msra.mxu1 %v4987_v5  ;;  %v5037_v5 = vpack.c.bf16 %v2745_v62, %v2744_v61  ;;  %v2757_v61 = vld [vmem:[#allocation3 + $0x468] sm:$0xff]  ;;  %v5034_v62 = vpack.c.bf16 %v2727_v56, %v2726_v55  ;;  %v2918_v55 = vld [vmem:[#allocation3 + $0x4d0] sm:$0xff]  ;;  %v2919_v56 = vld [vmem:[#allocation3 + $0x4d8] sm:$0xff] }
 0x232   : > { %4989 = vmatprep.subr.bf16.mxu1 %v5618_v0 }
 0x233   : > { %4967 = vmatpush3.bf16.msra.mxu0 %v4966_v10  ;;  %v2747_v10 = vld [vmem:[#allocation3 + $0x418] sm:$0xff] }
 0x234   : > { %4969 = vmatprep.subr.bf16.mxu0 %v4968_v11  ;;  %v5014_v11 = vpack.c.bf16 %v2717_v4, %v2716_v3  ;;  %v5040_v15 = vpack.c.bf16 %v2747_v10, %v2746_v9  ;;  %v2909_v3 = vld [vmem:[#allocation3 + $0x488] sm:$0xff]  ;;  %v5055_v4 = vpack.c.bf16 %v2757_v61, %v2756_v60  ;;  %v2760_v10 = vrot.slane %v5881_v47, 2  ;;  %v2948_v60 = vld [vmem:[#allocation3 + $0x5c0] sm:$0xff] }
 0x235   : > { %4991 = vmatpush3.bf16.msra.mxu1 %v4990_v14  ;;  %v2719_v14 = vld [vmem:[#allocation3 + $0x338] sm:$0xff]  ;;  %v2949_v61 = vld [vmem:[#allocation3 + $0x5c8] sm:$0xff] }
 0x236   : > { %4992 = vmatprep.subr.bf16.mxu1 %v5618_v0 }
 0x237   : > { %4971 = vmatpush3.bf16.msra.mxu0 %v4970_v19  ;;  %v2749_v19 = vld [vmem:[#allocation3 + $0x428] sm:$0xff] }
 0x238   : > { %4973 = vmatprep.subr.bf16.mxu0 %v4972_v20  ;;  %v5018_v20 = vpack.c.bf16 %v2719_v14, %v2718_v13  ;;  %v5043_v24 = vpack.c.bf16 %v2749_v19, %v2748_v18  ;;  %v2911_v13 = vld [vmem:[#allocation3 + $0x498] sm:$0xff]  ;;  %v2957_v14 = vrot.slane %v5887_v49, 3  ;;  %v2940_v18 = vld [vmem:[#allocation3 + $0x580] sm:$0xff]  ;;  %v2941_v19 = vld [vmem:[#allocation3 + $0x588] sm:$0xff]  ;;  %v2762_v49 = vrot.slane %v5884_v48, 2 }
 0x239   : > { %4994 = vmatpush3.bf16.msra.mxu1 %v4993_v23  ;;  %v2721_v23 = vld [vmem:[#allocation3 + $0x348] sm:$0xff] }
 0x23a   : > { %4995 = vmatprep.subr.bf16.mxu1 %v5618_v0 }
 0x23b   : > { %4975 = vmatpush3.bf16.msra.mxu0 %v4974_v28  ;;  %v2751_v28 = vld [vmem:[#allocation3 + $0x438] sm:$0xff] }
 0x23c   : > { %4977 = vmatprep.subr.bf16.mxu0 %v4976_v29  ;;  %v5022_v29 = vpack.c.bf16 %v2721_v23, %v2720_v22  ;;  %v5046_v33 = vpack.c.bf16 %v2751_v28, %v2750_v27  ;;  %v2912_v22 = vld [vmem:[#allocation3 + $0x4a0] sm:$0xff]  ;;  %v2913_v23 = vld [vmem:[#allocation3 + $0x4a8] sm:$0xff]  ;;  %v2942_v27 = vld [vmem:[#allocation3 + $0x590] sm:$0xff] }
 0x23d   : > { %4997 = vmatpush3.bf16.msra.mxu1 %v4996_v32  ;;  %v2723_v32 = vld [vmem:[#allocation3 + $0x358] sm:$0xff] }
 0x23e   : > { %4998 = vmatprep.subr.bf16.mxu1 %v5618_v0  ;;  %v2943_v28 = vld [vmem:[#allocation3 + $0x598] sm:$0xff] }
 0x23f   : > { %4979 = vmatpush3.bf16.msra.mxu0 %v4978_v38  ;;  %v2753_v38 = vld [vmem:[#allocation3 + $0x448] sm:$0xff] }
 0x240   : > { %5005 = vmatprep.subr.bf16.mxu0 %v5004_v39  ;;  %v5026_v39 = vpack.c.bf16 %v2723_v32, %v2722_v31  ;;  %v5049_v45 = vpack.c.bf16 %v2753_v38, %v2752_v36  ;;  %v2914_v31 = vld [vmem:[#allocation3 + $0x4b0] sm:$0xff]  ;;  %v2915_v32 = vld [vmem:[#allocation3 + $0x4b8] sm:$0xff]  ;;  %v2944_v36 = vld [vmem:[#allocation3 + $0x5a0] sm:$0xff] }
 0x241   : > { %5000 = vmatpush3.bf16.msra.mxu1 %v4999_v44  ;;  %v2725_v44 = vld [vmem:[#allocation3 + $0x368] sm:$0xff] }
 0x242   : > { %2635 = vmatmul.mubr.f32.vlgmr.msra.gmra.mrb[6].mxu0 %v2564_v53  ;;  %5001 = vmatprep.subr.bf16.mxu1 %v5618_v0  ;;  %v5030_v53 = vpack.c.bf16 %v2725_v44, %v2724_v42  ;;  %v2945_v38 = vld [vmem:[#allocation3 + $0x5a8] sm:$0xff]  ;;  %v2916_v42 = vld [vmem:[#allocation3 + $0x4c0] sm:$0xff] }
 0x243   : > { %5007 = vmatpush3.bf16.msra.mxu0 %v5006_v52  ;;  %2830 = vmatprep.mubr.f32.mxu0 %v2761_v57  ;;  %v2755_v52 = vld [vmem:[#allocation3 + $0x458] sm:$0xff]  ;;  %v2917_v44 = vld [vmem:[#allocation3 + $0x4c8] sm:$0xff] }
 0x244   : > { %5009 = vmatprep.subr.bf16.mxu0 %v5008_v54  ;;  %v5032_v54 = vpack.c.bf16 %v2743_v50, %v2742_v46  ;;  %v5052_v57 = vpack.c.bf16 %v2755_v52, %v2754_v51  ;;  %v2934_v46 = vld [vmem:[#allocation3 + $0x550] sm:$0xff]  ;;  %v2935_v50 = vld [vmem:[#allocation3 + $0x558] sm:$0xff] }
 0x245   : > { %5003 = vmatpush3.bf16.msra.mxu1 %v5002_v58  ;;  %v2924_v58 = vld [vmem:[#allocation3 + $0x500] sm:$0xff]  ;;  %v2946_v51 = vld [vmem:[#allocation3 + $0x5b0] sm:$0xff]  ;;  %v2947_v52 = vld [vmem:[#allocation3 + $0x5b8] sm:$0xff] }
 0x246   : > { %5036 = vmatprep.subr.bf16.mxu1 %v5618_v0 }
 0x247   : > { %5011 = vmatpush3.bf16.msra.mxu0 %v5010_v63  ;;  %v5060_v63 = vpack.c.bf16 %v2925_v59, %v2924_v58  ;;  %v2936_v58 = vld [vmem:[#allocation3 + $0x560] sm:$0xff]  ;;  %v2937_v59 = vld [vmem:[#allocation3 + $0x568] sm:$0xff] }
 0x248   : > { %4652 = vmatmul.mubr.f32.vlgmr.msra.gmra.mrb[4].mxu1 %v2566_v8  ;;  %5013 = vmatprep.subr.bf16.mxu0 %v5012_v2  ;;  %v2908_v2 = vld [vmem:[#allocation3 + $0x480] sm:$0xff]  ;;  %v2759_v8 = vld [vmem:[#allocation3 + $0x478] sm:$0xff] }
 0x249   : > { %5038 = vmatpush3.bf16.msra.mxu1 %v5037_v5  ;;  %4686 = vmatprep.mubr.msk.f32.mxu1 %vm5620_vm0, %v5619_v1  ;;  %v2926_v5 = vld [vmem:[#allocation3 + $0x510] sm:$0xff]  ;;  %v5062_v9 = vpack.c.bf16 %v2909_v3, %v2908_v2  ;;  %v2920_v2 = vld [vmem:[#allocation3 + $0x4e0] sm:$0xff]  ;;  %v2921_v3 = vld [vmem:[#allocation3 + $0x4e8] sm:$0xff] }
 0x24a   : > { %5039 = vmatprep.subr.bf16.mxu1 %v5618_v0 }
 0x24b   : > { %5015 = vmatpush3.bf16.msra.mxu0 %v5014_v11  ;;  %v5064_v11 = vpack.c.bf16 %v2927_v6, %v2926_v5  ;;  %v2938_v5 = vld [vmem:[#allocation3 + $0x570] sm:$0xff]  ;;  %v2939_v6 = vld [vmem:[#allocation3 + $0x578] sm:$0xff] }
 0x24c   : > { %5017 = vmatprep.subr.bf16.mxu0 %v5016_v12  ;;  %v2910_v12 = vld [vmem:[#allocation3 + $0x490] sm:$0xff] }
 0x24d   : > { %5041 = vmatpush3.bf16.msra.mxu1 %v5040_v15  ;;  %v5058_v15 = vpack.c.bf16 %v2759_v8, %v2758_v7  ;;  %v2950_v7 = vld [vmem:[#allocation3 + $0x5d0] sm:$0xff]  ;;  %v2951_v8 = vld [vmem:[#allocation3 + $0x5d8] sm:$0xff] }
 0x24e   : > { %5042 = vmatprep.subr.bf16.mxu1 %v5618_v0 }
 0x24f   : > { %5019 = vmatpush3.bf16.msra.mxu0 %v5018_v20  ;;  %v5066_v20 = vpack.c.bf16 %v2911_v13, %v2910_v12  ;;  %v2923_v12 = vld [vmem:[#allocation3 + $0x4f8] sm:$0xff]  ;;  %v5108_v13 = vpack.c.bf16 %v2951_v8, %v2950_v7  ;;  %v3115_v8 = vld [vmem:[#allocation6 + $0x50] sm:$0xff] }
 0x250   : > { %5021 = vmatprep.subr.bf16.mxu0 %v5020_v21  ;;  %v5068_v21 = vpack.c.bf16 %v2929_v17, %v2928_v16  ;;  %v2952_v16 = vld [vmem:[#allocation3 + $0x5e0] sm:$0xff]  ;;  %v2953_v17 = vld [vmem:[#allocation3 + $0x5e8] sm:$0xff] }
 0x251   : > { %5044 = vmatpush3.bf16.msra.mxu1 %v5043_v24  ;;  %v5093_v24 = vpack.c.bf16 %v2941_v19, %v2940_v18 }
 0x252   : > { %5045 = vmatprep.subr.bf16.mxu1 %v5618_v0 }
 0x253   : > { %5023 = vmatpush3.bf16.msra.mxu0 %v5022_v29  ;;  %v5070_v29 = vpack.c.bf16 %v2913_v23, %v2912_v22  ;;  %v5111_v22 = vpack.c.bf16 %v2953_v17, %v2952_v16  ;;  %v3123_v23 = vld [vmem:[#allocation6 + $0x90] sm:$0xff]  ;;  %v3117_v17 = vld [vmem:[#allocation6 + $0x60] sm:$0xff] }
 0x254   : > { %5025 = vmatprep.subr.bf16.mxu0 %v5024_v30  ;;  %v5072_v30 = vpack.c.bf16 %v2931_v26, %v2930_v25  ;;  %v2954_v25 = vld [vmem:[#allocation3 + $0x5f0] sm:$0xff]  ;;  %v2955_v26 = vld [vmem:[#allocation3 + $0x5f8] sm:$0xff] }
 0x255   : > { %5047 = vmatpush3.bf16.msra.mxu1 %v5046_v33  ;;  %v5096_v33 = vpack.c.bf16 %v2943_v28, %v2942_v27  ;;  %v2956_v27 = vrot.slane %v5881_v47, 3 }
 0x256   : > { %5048 = vmatprep.subr.bf16.mxu1 %v5618_v0 }
 0x257   : > { %5027 = vmatpush3.bf16.msra.mxu0 %v5026_v39  ;;  %v5074_v39 = vpack.c.bf16 %v2915_v32, %v2914_v31  ;;  %v5114_v31 = vpack.c.bf16 %v2955_v26, %v2954_v25  ;;  %v3125_v32 = vld [vmem:[#allocation6 + $0xa0] sm:$0xff]  ;;  %v3119_v26 = vld [vmem:[#allocation6 + $0x70] sm:$0xff] }
 0x258   : > { %5029 = vmatprep.subr.bf16.mxu0 %v5028_v41  ;;  %v5076_v41 = vpack.c.bf16 %v2933_v35, %v2932_v34  ;;  %v3137_v34 = vld [vmem:[#allocation6 + $0x100] sm:$0xff]  ;;  %v3138_v35 = vld [vmem:[#allocation6 + $0x108] sm:$0xff] }
 0x259   : > { %5050 = vmatpush3.bf16.msra.mxu1 %v5049_v45  ;;  %v5099_v45 = vpack.c.bf16 %v2945_v38, %v2944_v36  ;;  %v5149_v47 = vpack.c.bf16 %v3138_v35, %v3137_v34  ;;  %v3151_v35 = vld [vmem:[#allocation6 + $0x170] sm:$0xff] }
 0x25a   : > { %5051 = vmatprep.subr.bf16.mxu1 %v5618_v0 }
 0x25b   : > { %5031 = vmatpush3.bf16.msra.mxu0 %v5030_v53  ;;  %v5078_v53 = vpack.c.bf16 %v2917_v44, %v2916_v42  ;;  %v3127_v42 = vld [vmem:[#allocation6 + $0xb0] sm:$0xff]  ;;  %v3128_v44 = vld [vmem:[#allocation6 + $0xb8] sm:$0xff] }
 0x25c   : > { %5033 = vmatprep.subr.bf16.mxu0 %v5032_v54  ;;  %v5080_v54 = vpack.c.bf16 %v2935_v50, %v2934_v46  ;;  %v3139_v46 = vld [vmem:[#allocation6 + $0x110] sm:$0xff]  ;;  %v3140_v50 = vld [vmem:[#allocation6 + $0x118] sm:$0xff] }
 0x25d   : > { %5053 = vmatpush3.bf16.msra.mxu1 %v5052_v57  ;;  %v5102_v57 = vpack.c.bf16 %v2947_v52, %v2946_v51  ;;  %v5128_v52 = vpack.c.bf16 %v3128_v44, %v3127_v42 }
 0x25e   : > { %5054 = vmatprep.subr.bf16.mxu1 %v5618_v0 }
 0x25f   : > { %5035 = vmatpush3.bf16.msra.mxu0 %v5034_v62  ;;  %v5082_v62 = vpack.c.bf16 %v2919_v56, %v2918_v55  ;;  %v5152_v55 = vpack.c.bf16 %v3140_v50, %v3139_v46  ;;  %v3129_v56 = vld [vmem:[#allocation6 + $0xc0] sm:$0xff]  ;;  %v3296_v50 = vld [vmem:[#allocation6 + $0x188] sm:$0xff] }
 0x260   : > { %5061 = vmatprep.subr.bf16.mxu0 %v5060_v63  ;;  %v5084_v63 = vpack.c.bf16 %v2937_v59, %v2936_v58  ;;  %v3142_v58 = vld [vmem:[#allocation6 + $0x128] sm:$0xff]  ;;  %v3295_v46 = vld [vmem:[#allocation6 + $0x180] sm:$0xff] }
 0x261   : > { %5056 = vmatpush3.bf16.msra.mxu1 %v5055_v4  ;;  %v5105_v4 = vpack.c.bf16 %v2949_v61, %v2948_v60  ;;  %v3113_v61 = vld [vmem:[#allocation6 + $0x40] sm:$0xff] }
 0x262   : > { %2831 = vmatmul.mubr.f32.vlgmr.msra.gmra.mrb[8].mxu0 %v2760_v10  ;;  %5057 = vmatprep.subr.bf16.mxu1 %v5618_v0  ;;  %v5088_v10 = vpack.c.bf16 %v2939_v6, %v2938_v5  ;;  %v3144_v5 = vld [vmem:[#allocation6 + $0x138] sm:$0xff] }
 0x263   : > { %5063 = vmatpush3.bf16.msra.mxu0 %v5062_v9  ;;  %3026 = vmatprep.mubr.f32.mxu0 %v2957_v14  ;;  %v5086_v9 = vpack.c.bf16 %v2921_v3, %v2920_v2  ;;  %v3121_v14 = vld [vmem:[#allocation6 + $0x80] sm:$0xff]  ;;  %v3131_v2 = vld [vmem:[#allocation6 + $0xd0] sm:$0xff]  ;;  %v3132_v3 = vld [vmem:[#allocation6 + $0xd8] sm:$0xff] }
 0x264   : > { %5065 = vmatprep.subr.bf16.mxu0 %v5064_v11  ;;  %v2922_v11 = vld [vmem:[#allocation3 + $0x4f0] sm:$0xff]  ;;  %v5136_v7 = vpack.c.bf16 %v3132_v3, %v3131_v2  ;;  %v3315_v3 = vld [vmem:[#allocation6 + $0x220] sm:$0xff] }
 0x265   : > { %5059 = vmatpush3.bf16.msra.mxu1 %v5058_v15  ;;  %v3122_v15 = vld [vmem:[#allocation6 + $0x88] sm:$0xff]  ;;  %v5090_v18 = vpack.c.bf16 %v2923_v12, %v2922_v11  ;;  %v3133_v11 = vld [vmem:[#allocation6 + $0xe0] sm:$0xff] }
 0x266   : > { %5092 = vmatprep.subr.bf16.mxu1 %v5618_v0  ;;  %v5116_v19 = vpack.c.bf16 %v3122_v15, %v3121_v14  ;;  %v3134_v12 = vld [vmem:[#allocation6 + $0xe8] sm:$0xff] }
 0x267   : > { %5067 = vmatpush3.bf16.msra.mxu0 %v5066_v20  ;;  %v3105_v20 = vld [vmem:[#allocation6] sm:$0xff]  ;;  %v3146_v14 = vld [vmem:[#allocation6 + $0x148] sm:$0xff]  ;;  %v5140_v16 = vpack.c.bf16 %v3134_v12, %v3133_v11  ;;  %v3330_v11 = vld [vmem:[#allocation6 + $0x298] sm:$0xff] }
 0x268   : > { %4687 = vmatmul.mubr.f32.vlgmr.msra.gmra.mrb[4].mxu1 %v2762_v49  ;;  %5069 = vmatprep.subr.bf16.mxu0 %v5068_v21  ;;  %v3106_v21 = vld [vmem:[#allocation6 + $0x8] sm:$0xff]  ;;  %v3317_v12 = vld [vmem:[#allocation6 + $0x230] sm:$0xff] }
 0x269   : > { %5094 = vmatpush3.bf16.msra.mxu1 %v5093_v24  ;;  %4721 = vmatprep.mubr.msk.f32.mxu1 %vm5620_vm0, %v5619_v1  ;;  %v3124_v24 = vld [vmem:[#allocation6 + $0x98] sm:$0xff]  ;;  %v5118_v49 = vpack.c.bf16 %v3106_v21, %v3105_v20  ;;  %v3135_v20 = vld [vmem:[#allocation6 + $0xf0] sm:$0xff] }
 0x26a   : > { %5095 = vmatprep.subr.bf16.mxu1 %v5618_v0  ;;  %v5120_v28 = vpack.c.bf16 %v3124_v24, %v3123_v23  ;;  %v3136_v21 = vld [vmem:[#allocation6 + $0xf8] sm:$0xff] }
 0x26b   : > { %5071 = vmatpush3.bf16.msra.mxu0 %v5070_v29  ;;  %v3107_v29 = vld [vmem:[#allocation6 + $0x10] sm:$0xff]  ;;  %v3148_v23 = vld [vmem:[#allocation6 + $0x158] sm:$0xff]  ;;  %v5144_v25 = vpack.c.bf16 %v3136_v21, %v3135_v20  ;;  %v3319_v20 = vld [vmem:[#allocation6 + $0x240] sm:$0xff] }
 0x26c   : > { %5073 = vmatprep.subr.bf16.mxu0 %v5072_v30  ;;  %v3108_v30 = vld [vmem:[#allocation6 + $0x18] sm:$0xff]  ;;  %v3320_v21 = vld [vmem:[#allocation6 + $0x248] sm:$0xff] }
 0x26d   : > { %5097 = vmatpush3.bf16.msra.mxu1 %v5096_v33  ;;  %v3126_v33 = vld [vmem:[#allocation6 + $0xa8] sm:$0xff]  ;;  %v5122_v36 = vpack.c.bf16 %v3108_v30, %v3107_v29  ;;  %v3149_v30 = vld [vmem:[#allocation6 + $0x160] sm:$0xff] }
 0x26e   : > { %5098 = vmatprep.subr.bf16.mxu1 %v5618_v0  ;;  %v5124_v38 = vpack.c.bf16 %v3126_v33, %v3125_v32  ;;  %v3312_v29 = vld [vmem:[#allocation6 + $0x208] sm:$0xff] }
 0x26f   : > { %5075 = vmatpush3.bf16.msra.mxu0 %v5074_v39  ;;  %v3109_v39 = vld [vmem:[#allocation6 + $0x20] sm:$0xff] }
 0x270   : > { %5077 = vmatprep.subr.bf16.mxu0 %v5076_v41  ;;  %v3110_v41 = vld [vmem:[#allocation6 + $0x28] sm:$0xff] }
 0x271   : > { %5100 = vmatpush3.bf16.msra.mxu1 %v5099_v45  ;;  %v2958_v45 = vrot.slane %v5884_v48, 3  ;;  %v5126_v51 = vpack.c.bf16 %v3110_v41, %v3109_v39  ;;  %v3141_v48 = vld [vmem:[#allocation6 + $0x120] sm:$0xff]  ;;  %v629_v39 = vpop.permute.xlu1 %628 }
 0x272   : > { %5101 = vmatprep.subr.bf16.mxu1 %v5618_v0 }
 0x273   : > { %5079 = vmatpush3.bf16.msra.mxu0 %v5078_v53  ;;  %v3111_v53 = vld [vmem:[#allocation6 + $0x30] sm:$0xff] }
 0x274   : > { %5081 = vmatprep.subr.bf16.mxu0 %v5080_v54  ;;  %v3112_v54 = vld [vmem:[#allocation6 + $0x38] sm:$0xff] }
 0x275   : > { %5103 = vmatpush3.bf16.msra.mxu1 %v5102_v57  ;;  %v3130_v57 = vld [vmem:[#allocation6 + $0xc8] sm:$0xff]  ;;  %v5130_v59 = vpack.c.bf16 %v3112_v54, %v3111_v53  ;;  %v3314_v53 = vld [vmem:[#allocation6 + $0x218] sm:$0xff] }
 0x276   : > { %5104 = vmatprep.subr.bf16.mxu1 %v5618_v0  ;;  %v5132_v60 = vpack.c.bf16 %v3130_v57, %v3129_v56  ;;  %v5174_v56 = vpack.c.bf16 %v3296_v50, %v3295_v46  ;;  %v3297_v57 = vld [vmem:[#allocation6 + $0x190] sm:$0xff]  ;;  %v3338_v50 = vld [vmem:[#allocation6 + $0x2d8] sm:$0xff] }
 0x277   : > { %5083 = vmatpush3.bf16.msra.mxu0 %v5082_v62  ;;  %v3114_v62 = vld [vmem:[#allocation6 + $0x48] sm:$0xff]  ;;  %v3337_v46 = vld [vmem:[#allocation6 + $0x2d0] sm:$0xff] }
 0x278   : > { %5085 = vmatprep.subr.bf16.mxu0 %v5084_v63  ;;  %v5155_v63 = vpack.c.bf16 %v3142_v58, %v3141_v48  ;;  %v5134_v6 = vpack.c.bf16 %v3114_v62, %v3113_v61  ;;  %v3298_v61 = vld [vmem:[#allocation6 + $0x198] sm:$0xff]  ;;  %v3327_v62 = vld [vmem:[#allocation6 + $0x280] sm:$0xff] }
 0x279   : > { %5106 = vmatpush3.bf16.msra.mxu1 %v5105_v4  ;;  %v3143_v4 = vld [vmem:[#allocation6 + $0x130] sm:$0xff] }
 0x27a   : > { %5107 = vmatprep.subr.bf16.mxu1 %v5618_v0 }
 0x27b   : > { %5087 = vmatpush3.bf16.msra.mxu0 %v5086_v9  ;;  %v3116_v9 = vld [vmem:[#allocation6 + $0x58] sm:$0xff] }
 0x27c   : > { %5089 = vmatprep.subr.bf16.mxu0 %v5088_v10  ;;  %v5158_v10 = vpack.c.bf16 %v3144_v5, %v3143_v4  ;;  %v5138_v15 = vpack.c.bf16 %v3116_v9, %v3115_v8  ;;  %v3316_v4 = vld [vmem:[#allocation6 + $0x228] sm:$0xff]  ;;  %v5178_v5 = vpack.c.bf16 %v3298_v61, %v3297_v57 }
 0x27d   : > { %5109 = vmatpush3.bf16.msra.mxu1 %v5108_v13  ;;  %v3145_v13 = vld [vmem:[#allocation6 + $0x140] sm:$0xff]  ;;  %v5180_v8 = vpack.c.bf16 %v3316_v4, %v3315_v3  ;;  %v3300_v9 = vld [vmem:[#allocation6 + $0x1a8] sm:$0xff] }
 0x27e   : > { %5110 = vmatprep.subr.bf16.mxu1 %v5618_v0 }
 0x27f   : > { %5091 = vmatpush3.bf16.msra.mxu0 %v5090_v18  ;;  %v3118_v18 = vld [vmem:[#allocation6 + $0x68] sm:$0xff] }
 0x280   : > { %5117 = vmatprep.subr.bf16.mxu0 %v5116_v19  ;;  %v5161_v19 = vpack.c.bf16 %v3146_v14, %v3145_v13  ;;  %v5142_v24 = vpack.c.bf16 %v3118_v18, %v3117_v17  ;;  %v3318_v13 = vld [vmem:[#allocation6 + $0x238] sm:$0xff]  ;;  %v3331_v18 = vld [vmem:[#allocation6 + $0x2a0] sm:$0xff] }
 0x281   : > { %5112 = vmatpush3.bf16.msra.mxu1 %v5111_v22  ;;  %v3147_v22 = vld [vmem:[#allocation6 + $0x150] sm:$0xff]  ;;  %v5184_v17 = vpack.c.bf16 %v3318_v13, %v3317_v12 }
 0x282   : > { %3027 = vmatmul.mubr.f32.vlgmr.msra.gmra.mrb[10].mxu0 %v2956_v27  ;;  %5113 = vmatprep.subr.bf16.mxu1 %v5618_v0  ;;  %v5164_v27 = vpack.c.bf16 %v3148_v23, %v3147_v22 }
 0x283   : > { %5119 = vmatpush3.bf16.msra.mxu0 %v5118_v49  ;;  %v3120_v49 = vld [vmem:[#allocation6 + $0x78] sm:$0xff] }
 0x284   : > { %5121 = vmatprep.subr.bf16.mxu0 %v5120_v28  ;;  %v3311_v28 = vld [vmem:[#allocation6 + $0x200] sm:$0xff]  ;;  %v5146_v32 = vpack.c.bf16 %v3120_v49, %v3119_v26  ;;  %v3304_v26 = vld [vmem:[#allocation6 + $0x1c8] sm:$0xff]  ;;  %v3333_v49 = vld [vmem:[#allocation6 + $0x2b0] sm:$0xff] }
 0x285   : > { %5115 = vmatpush3.bf16.msra.mxu1 %v5114_v31  ;;  %v3150_v31 = vld [vmem:[#allocation6 + $0x168] sm:$0xff]  ;;  %v5172_v33 = vpack.c.bf16 %v3312_v29, %v3311_v28  ;;  %v3321_v28 = vld [vmem:[#allocation6 + $0x250] sm:$0xff]  ;;  %v3322_v29 = vld [vmem:[#allocation6 + $0x258] sm:$0xff] }
 0x286   : > { %5148 = vmatprep.subr.bf16.mxu1 %v5618_v0  ;;  %v5167_v34 = vpack.c.bf16 %v3150_v31, %v3149_v30 }
 0x287   : > { %5123 = vmatpush3.bf16.msra.mxu0 %v5122_v36  ;;  %v3152_v36 = vld [vmem:[#allocation6 + $0x178] sm:$0xff] }
 0x288   : > { %4722 = vmatmul.mubr.f32.vlgmr.msra.gmra.mrb[4].mxu1 %v2958_v45  ;;  %5125 = vmatprep.subr.bf16.mxu0 %v5124_v38  ;;  %v5170_v38 = vpack.c.bf16 %v3152_v36, %v3151_v35  ;;  %v3335_v35 = vld [vmem:[#allocation6 + $0x2c0] sm:$0xff]  ;;  %v3336_v36 = vld [vmem:[#allocation6 + $0x2c8] sm:$0xff] }
 0x289   : > { %5150 = vmatpush3.bf16.msra.mxu1 %v5149_v47  ;;  %4756 = vmatprep.mubr.msk.f32.mxu1 %vm5620_vm0, %v5619_v1 }
 0x28a   : > { %5151 = vmatprep.subr.bf16.mxu1 %v5618_v0 }
 0x28b   : > { %5127 = vmatpush3.bf16.msra.mxu0 %v5126_v51 }
 0x28c   : > { %5129 = vmatprep.subr.bf16.mxu0 %v5128_v52  ;;  %v3313_v52 = vld [vmem:[#allocation6 + $0x210] sm:$0xff] }
 0x28d   : > { %5153 = vmatpush3.bf16.msra.mxu1 %v5152_v55 }
 0x28e   : > { %5154 = vmatprep.subr.bf16.mxu1 %v5618_v0 }
 0x28f   : > { %5131 = vmatpush3.bf16.msra.mxu0 %v5130_v59 }
 0x290   : > { %5133 = vmatprep.subr.bf16.mxu0 %v5132_v60  ;;  %v5176_v60 = vpack.c.bf16 %v3314_v53, %v3313_v52  ;;  %v3326_v52 = vld [vmem:[#allocation6 + $0x278] sm:$0xff] }
 0x291   : > { %5156 = vmatpush3.bf16.msra.mxu1 %v5155_v63  ;;  %v3328_v63 = vld [vmem:[#allocation6 + $0x288] sm:$0xff] }
 0x292   : > { %5157 = vmatprep.subr.bf16.mxu1 %v5618_v0 }
 0x293   : > { %5135 = vmatpush3.bf16.msra.mxu0 %v5134_v6  ;;  %v3299_v6 = vld [vmem:[#allocation6 + $0x1a0] sm:$0xff] }
 0x294   : > { %5137 = vmatprep.subr.bf16.mxu0 %v5136_v7  ;;  %v5182_v14 = vpack.c.bf16 %v3300_v9, %v3299_v6  ;;  %v3342_v6 = vld [vmem:[#allocation6 + $0x2f8] sm:$0xff]  ;;  %v3495_v9 = vld [vmem:[#allocation6 + $0x308] sm:$0xff] }
 0x295   : > { %5159 = vmatpush3.bf16.msra.mxu1 %v5158_v10  ;;  %v3329_v10 = vld [vmem:[#allocation6 + $0x290] sm:$0xff] }
 0x296   : > { %5160 = vmatprep.subr.bf16.mxu1 %v5618_v0 }
 0x297   : > { %5139 = vmatpush3.bf16.msra.mxu0 %v5138_v15  ;;  %v5208_v15 = vpack.c.bf16 %v3330_v11, %v3329_v10  ;;  %v3512_v10 = vld [vmem:[#allocation6 + $0x390] sm:$0xff]  ;;  %v3513_v11 = vld [vmem:[#allocation6 + $0x398] sm:$0xff] }
 0x298   : > { %5141 = vmatprep.subr.bf16.mxu0 %v5140_v16  ;;  %v3301_v16 = vld [vmem:[#allocation6 + $0x1b0] sm:$0xff] }
 0x299   : > { %5162 = vmatpush3.bf16.msra.mxu1 %v5161_v19  ;;  %v3332_v19 = vld [vmem:[#allocation6 + $0x2a8] sm:$0xff] }
 0x29a   : > { %5163 = vmatprep.subr.bf16.mxu1 %v5618_v0  ;;  %v5211_v23 = vpack.c.bf16 %v3332_v19, %v3331_v18  ;;  %v3527_v18 = vld [vmem:[#allocation6 + $0x408] sm:$0xff]  ;;  %v3514_v19 = vld [vmem:[#allocation6 + $0x3a0] sm:$0xff] }
 0x29b   : > { %5143 = vmatpush3.bf16.msra.mxu0 %v5142_v24  ;;  %v3303_v24 = vld [vmem:[#allocation6 + $0x1c0] sm:$0xff] }
 0x29c   : > { %5145 = vmatprep.subr.bf16.mxu0 %v5144_v25  ;;  %v5188_v25 = vpack.c.bf16 %v3320_v21, %v3319_v20  ;;  %v5190_v30 = vpack.c.bf16 %v3304_v26, %v3303_v24  ;;  %v3515_v20 = vld [vmem:[#allocation6 + $0x3a8] sm:$0xff]  ;;  %v3498_v24 = vld [vmem:[#allocation6 + $0x320] sm:$0xff] }
 0x29d   : > { %5165 = vmatpush3.bf16.msra.mxu1 %v5164_v27  ;;  %v3334_v27 = vld [vmem:[#allocation6 + $0x2b8] sm:$0xff]  ;;  %v5236_v26 = vpack.c.bf16 %v3515_v20, %v3514_v19  ;;  %v3706_v19 = vld [vmem:[#allocation6 + $0x500] sm:$0xff]  ;;  %v3707_v20 = vld [vmem:[#allocation6 + $0x508] sm:$0xff] }
 0x29e   : > { %5166 = vmatprep.subr.bf16.mxu1 %v5618_v0  ;;  %v5214_v31 = vpack.c.bf16 %v3334_v27, %v3333_v49  ;;  %v3499_v49 = vld [vmem:[#allocation6 + $0x328] sm:$0xff]  ;;  %v3528_v27 = vld [vmem:[#allocation6 + $0x410] sm:$0xff] }
 0x29f   : > { %5147 = vmatpush3.bf16.msra.mxu0 %v5146_v32  ;;  %v3305_v32 = vld [vmem:[#allocation6 + $0x1d0] sm:$0xff] }
 0x2a0   : > { %5173 = vmatprep.subr.bf16.mxu0 %v5172_v33  ;;  %v5192_v33 = vpack.c.bf16 %v3322_v29, %v3321_v28  ;;  %v3529_v28 = vld [vmem:[#allocation6 + $0x418] sm:$0xff]  ;;  %v3516_v29 = vld [vmem:[#allocation6 + $0x3b0] sm:$0xff] }
 0x2a1   : > { %5168 = vmatpush3.bf16.msra.mxu1 %v5167_v34  ;;  %v3306_v34 = vld [vmem:[#allocation6 + $0x1d8] sm:$0xff] }
 0x2a2   : > { %5169 = vmatprep.subr.bf16.mxu1 %v5618_v0 }
 0x2a5   : > { %5171 = vmatpush3.bf16.msra.mxu1 %v5170_v38  ;;  %v3323_v38 = vld [vmem:[#allocation6 + $0x260] sm:$0xff] }
 0x2a6   : > { %5204 = vmatprep.subr.bf16.mxu1 %v5618_v0 }
 0x2d5   : > { %v2241_v41 = vpop.f32.mrb[2].mxu0 }
 0x2d6   : > { %v5340_v47 = vadd.f32 %v2241_v41, %v629_v39  ;;  %v2243_v42 = vpop.f32.mrb[3].mxu0  ;;  %v5194_v41 = vpack.c.bf16 %v3306_v34, %v3305_v32  ;;  %v5264_v32 = vpack.c.bf16 %v3529_v28, %v3528_v27  ;;  %v3541_v27 = vld [vmem:[#allocation6 + $0x478] sm:$0xff]  ;;  %v3690_v28 = vld [vmem:[#allocation6 + $0x480] sm:$0xff] }
 0x2d7   : > { %v5341_v44 = vadd.f32 %v2243_v42, %v629_v39  ;;  %v3307_v42 = vld [vmem:[#allocation6 + $0x1e0] sm:$0xff] }
 0x2d8   : > { %v2319_v45 = vmax.f32 %v5340_v47, 0.0  ;;  %v5217_v47 = vpack.c.bf16 %v3336_v36, %v3335_v35  ;;  %v3501_v35 = vld [vmem:[#allocation6 + $0x338] sm:$0xff]  ;;  %v3530_v36 = vld [vmem:[#allocation6 + $0x420] sm:$0xff] }
 0x2d9   : > { %v2320_v51 = vmax.f32 %v5341_v44, 0.0 }
 0x2da   : > { %v6104_v48 = vmul.f32 %v2319_v45, %v5874_v37  ;;  %v5205_v37 = vpack.c.bf16 %v3328_v63, %v3327_v62  ;;  %v3308_v45 = vld [vmem:[#allocation6 + $0x1e8] sm:$0xff]  ;;  %v3510_v62 = vld [vmem:[#allocation6 + $0x380] sm:$0xff] }
 0x2db   : > { %v6101_v54 = vmul.f32 %v2320_v51, %v5878_v43  ;;  %v2312_v55 = vpop.f32.mrb[2].mxu1  ;;  %v3325_v51 = vld [vmem:[#allocation6 + $0x270] sm:$0xff]  ;;  %v5198_v53 = vpack.c.bf16 %v3308_v45, %v3307_v42  ;;  %v3511_v63 = vld [vmem:[#allocation6 + $0x388] sm:$0xff] }
 0x2dc   : > { %v5342_v58 = vadd.f32 %v2312_v55, %v629_v39  ;;  %v4583_v59 = vpop.f32.mrb[3].mxu1  ;;  %v3324_v39 = vld [vmem:[#allocation6 + $0x268] sm:$0xff]  ;;  %v5220_v55 = vpack.c.bf16 %v3338_v50, %v3337_v46  ;;  %v5200_v57 = vpack.c.bf16 %v3326_v52, %v3325_v51  ;;  %v3532_v50 = vld [vmem:[#allocation6 + $0x430] sm:$0xff]  ;;  %v3533_v51 = vld [vmem:[#allocation6 + $0x438] sm:$0xff] }
 0x2dd   : > { %3217 = vmatprep.mubr.f32.mxu0 %v6101_v54  ;;  %v3347_v2 = vrot.slane %v6101_v54, 1  ;;  %v5196_v44 = vpack.c.bf16 %v3324_v39, %v3323_v38  ;;  %v3339_v59 = vld [vmem:[#allocation6 + $0x2e0] sm:$0xff]  ;;  %v3543_v21 = vrot.slane %v6101_v54, 2  ;;  %v3531_v38 = vld [vmem:[#allocation6 + $0x428] sm:$0xff]  ;;  %v3520_v52 = vld [vmem:[#allocation6 + $0x3d0] sm:$0xff] }
 0x2de   : > { %v2321_v43 = vmax.f32 %v5342_v58, 0.0  ;;  %3218 = vmatmul.mubr.f32.vlgmr.msra.gmra.mrb[12].mxu0 %v6104_v48  ;;  %v3310_v58 = vld [vmem:[#allocation6 + $0x1f8] sm:$0xff]  ;;  %v3518_v39 = vld [vmem:[#allocation6 + $0x3c0] sm:$0xff]  ;;  %v5267_v42 = vpack.c.bf16 %v3531_v38, %v3530_v36  ;;  %v3503_v46 = vld [vmem:[#allocation6 + $0x348] sm:$0xff] }
 0x2df   : > { %5175 = vmatpush3.bf16.msra.mxu0 %v5174_v56  ;;  %3416 = vmatprep.mubr.f32.mxu0 %v3347_v2  ;;  %v3309_v56 = vld [vmem:[#allocation6 + $0x1f0] sm:$0xff]  ;;  %v3693_v38 = vld [vmem:[#allocation6 + $0x498] sm:$0xff] }
 0x2e0   : > { %v6110_v7 = vmul.f32 %v2321_v43, %v5876_v40  ;;  %5177 = vmatprep.subr.bf16.mxu0 %v5176_v60  ;;  %v3302_v40 = vld [vmem:[#allocation6 + $0x1b8] sm:$0xff]  ;;  %v3340_v60 = vld [vmem:[#allocation6 + $0x2e8] sm:$0xff]  ;;  %v5202_v4 = vpack.c.bf16 %v3310_v58, %v3309_v56  ;;  %v5270_v56 = vpack.c.bf16 %v3533_v51, %v3532_v50  ;;  %v3694_v50 = vld [vmem:[#allocation6 + $0x4a0] sm:$0xff] }
 0x2e1   : > { %v5186_v22 = vpack.c.bf16 %v3302_v40, %v3301_v16  ;;  %v5223_v43 = vpack.c.bf16 %v3340_v60, %v3339_v59  ;;  %v5232_v16 = vpack.c.bf16 %v3513_v11, %v3512_v10  ;;  %v3526_v40 = vld [vmem:[#allocation6 + $0x400] sm:$0xff]  ;;  %v3505_v59 = vld [vmem:[#allocation6 + $0x358] sm:$0xff] }
 0x2e2   : > { %4757 = vmatmul.mubr.f32.vlgmr.msra.gmra.mrb[6].mxu1 %v6110_v7  ;;  %v3534_v60 = vld [vmem:[#allocation6 + $0x440] sm:$0xff]  ;;  %v3525_v10 = vld [vmem:[#allocation6 + $0x3f8] sm:$0xff]  ;;  %v3544_v51 = vrot.slane %v6110_v7, 2 }
 0x2e3   : > { %5179 = vmatpush3.bf16.msra.mxu0 %v5178_v5  ;;  %5206 = vmatpush3.bf16.msra.mxu1 %v5205_v37  ;;  %v3341_v5 = vld [vmem:[#allocation6 + $0x2f0] sm:$0xff]  ;;  %v5228_v37 = vpack.c.bf16 %v3511_v63, %v3510_v62  ;;  %v3522_v62 = vld [vmem:[#allocation6 + $0x3e0] sm:$0xff]  ;;  %v3523_v63 = vld [vmem:[#allocation6 + $0x3e8] sm:$0xff] }
 0x2e4   : > { %5181 = vmatprep.subr.bf16.mxu0 %v5180_v8  ;;  %5207 = vmatprep.subr.bf16.mxu1 %v5618_v0  ;;  %v3494_v8 = vld [vmem:[#allocation6 + $0x300] sm:$0xff]  ;;  %v5226_v12 = vpack.c.bf16 %v3342_v6, %v3341_v5  ;;  %v5252_v5 = vpack.c.bf16 %v3523_v63, %v3522_v62  ;;  %v3536_v6 = vld [vmem:[#allocation6 + $0x450] sm:$0xff]  ;;  %v3697_v62 = vld [vmem:[#allocation6 + $0x4b8] sm:$0xff] }
 0x2e5   : > { %4791 = vmatprep.mubr.msk.f32.mxu1 %vm5620_vm0, %v5619_v1  ;;  %v5230_v13 = vpack.c.bf16 %v3495_v9, %v3494_v8  ;;  %v3537_v8 = vld [vmem:[#allocation6 + $0x458] sm:$0xff]  ;;  %v3524_v9 = vld [vmem:[#allocation6 + $0x3f0] sm:$0xff]  ;;  %v3726_v63 = vld [vmem:[#allocation6 + $0x5a0] sm:$0xff] }
 0x2e7   : > { %5183 = vmatpush3.bf16.msra.mxu0 %v5182_v14  ;;  %5209 = vmatpush3.bf16.msra.mxu1 %v5208_v15  ;;  %v3496_v14 = vld [vmem:[#allocation6 + $0x310] sm:$0xff]  ;;  %v3346_v15 = vrot.slane %v6104_v48, 1 }
 0x2e8   : > { %5185 = vmatprep.subr.bf16.mxu0 %v5184_v17  ;;  %5210 = vmatprep.subr.bf16.mxu1 %v5618_v0  ;;  %v3497_v17 = vld [vmem:[#allocation6 + $0x318] sm:$0xff] }
 0x2eb   : > { %5187 = vmatpush3.bf16.msra.mxu0 %v5186_v22  ;;  %5212 = vmatpush3.bf16.msra.mxu1 %v5211_v23  ;;  %v5234_v22 = vpack.c.bf16 %v3497_v17, %v3496_v14  ;;  %v5261_v23 = vpack.c.bf16 %v3527_v18, %v3526_v40  ;;  %v3509_v14 = vld [vmem:[#allocation6 + $0x378] sm:$0xff]  ;;  %v3538_v17 = vld [vmem:[#allocation6 + $0x460] sm:$0xff]  ;;  %v3539_v40 = vld [vmem:[#allocation6 + $0x468] sm:$0xff] }
 0x2ec   : > { %5189 = vmatprep.subr.bf16.mxu0 %v5188_v25  ;;  %5213 = vmatprep.subr.bf16.mxu1 %v5618_v0  ;;  %v3348_v25 = vrot.slane %v6110_v7, 1 }
 0x2ef   : > { %5191 = vmatpush3.bf16.msra.mxu0 %v5190_v30  ;;  %5215 = vmatpush3.bf16.msra.mxu1 %v5214_v31  ;;  %v3517_v30 = vld [vmem:[#allocation6 + $0x3b8] sm:$0xff]  ;;  %v5238_v31 = vpack.c.bf16 %v3499_v49, %v3498_v24  ;;  %v5284_v49 = vpack.c.bf16 %v3707_v20, %v3706_v19  ;;  %v3718_v19 = vld [vmem:[#allocation6 + $0x560] sm:$0xff]  ;;  %v3719_v20 = vld [vmem:[#allocation6 + $0x568] sm:$0xff] }
 0x2f0   : > { %5193 = vmatprep.subr.bf16.mxu0 %v5192_v33  ;;  %5216 = vmatprep.subr.bf16.mxu1 %v5618_v0  ;;  %v3500_v33 = vld [vmem:[#allocation6 + $0x330] sm:$0xff]  ;;  %v5240_v34 = vpack.c.bf16 %v3517_v30, %v3516_v29  ;;  %v3691_v29 = vld [vmem:[#allocation6 + $0x488] sm:$0xff] }
 0x2f3   : > { %5195 = vmatpush3.bf16.msra.mxu0 %v5194_v41  ;;  %5218 = vmatpush3.bf16.msra.mxu1 %v5217_v47  ;;  %v3519_v41 = vld [vmem:[#allocation6 + $0x3c8] sm:$0xff]  ;;  %v5242_v47 = vpack.c.bf16 %v3501_v35, %v3500_v33  ;;  %v3542_v35 = vrot.slane %v6104_v48, 2 }
 0x2f4   : > { %5197 = vmatprep.subr.bf16.mxu0 %v5196_v44  ;;  %5219 = vmatprep.subr.bf16.mxu1 %v5618_v0  ;;  %v3502_v44 = vld [vmem:[#allocation6 + $0x340] sm:$0xff]  ;;  %v5244_v45 = vpack.c.bf16 %v3519_v41, %v3518_v39  ;;  %v3723_v41 = vld [vmem:[#allocation6 + $0x588] sm:$0xff] }
 0x2f5   : > { %v4129_v61 = vpop.f32.mrb[4].mxu0  ;;  %v3722_v39 = vld [vmem:[#allocation6 + $0x580] sm:$0xff] }
 0x2f6   : > { %v4130_v2 = vpop.f32.mrb[5].mxu0 }
 0x2f7   : > { %v6120_v3 = vadd.f32 %v4130_v2, %v4129_v61  ;;  %5199 = vmatpush3.bf16.msra.mxu0 %v5198_v53  ;;  %5221 = vmatpush3.bf16.msra.mxu1 %v5220_v55  ;;  %v3521_v53 = vld [vmem:[#allocation6 + $0x3d8] sm:$0xff]  ;;  %v5246_v55 = vpack.c.bf16 %v3503_v46, %v3502_v44  ;;  %v3535_v61 = vld [vmem:[#allocation6 + $0x448] sm:$0xff]  ;;  %v3739_v44 = vrot.slane %v6101_v54, 3  ;;  %v5317_v46 = vpack.c.bf16 %v3723_v41, %v3722_v39 }
 0x2f8   : > { %5201 = vmatprep.subr.bf16.mxu0 %v5200_v57  ;;  %5222 = vmatprep.subr.bf16.mxu1 %v5618_v0  ;;  %v3504_v57 = vld [vmem:[#allocation6 + $0x350] sm:$0xff]  ;;  %v5248_v58 = vpack.c.bf16 %v3521_v53, %v3520_v52  ;;  %v3695_v53 = vld [vmem:[#allocation6 + $0x4a8] sm:$0xff] }
 0x2f9   : > { %v5250_v2 = vpack.c.bf16 %v3505_v59, %v3504_v57  ;;  %v3712_v57 = vld [vmem:[#allocation6 + $0x530] sm:$0xff]  ;;  %v5294_v54 = vpack.c.bf16 %v3695_v53, %v3694_v50  ;;  %v3738_v50 = vrot.slane %v6104_v48, 3  ;;  %v3104_v48 = vld [vmem:[%s6222_s10] sm:$0x1] }
 0x2fb   : > { %5203 = vmatpush3.bf16.msra.mxu0 %v5202_v4  ;;  %5224 = vmatpush3.bf16.msra.mxu1 %v5223_v43  ;;  %v5273_v4 = vpack.c.bf16 %v3535_v61, %v3534_v60  ;;  %v3506_v43 = vld [vmem:[#allocation6 + $0x360] sm:$0xff]  ;;  %v3696_v60 = vld [vmem:[#allocation6 + $0x4b0] sm:$0xff] }
 0x2fc   : > { %5225 = vmatprep.subr.bf16.mxu1 %v5618_v0  ;;  %5229 = vmatprep.subr.bf16.mxu0 %v5228_v37  ;;  %v3507_v37 = vld [vmem:[#allocation6 + $0x368] sm:$0xff] }
 0x2fd   : > { %v5254_v11 = vpack.c.bf16 %v3507_v37, %v3506_v43  ;;  %v3715_v43 = vld [vmem:[#allocation6 + $0x548] sm:$0xff] }
 0x2fe   : > { %3417 = vmatmul.mubr.f32.vlgmr.msra.gmra.mrb[14].mxu0 %v3346_v15  ;;  %v2325_v15 = vld [vmem:[%s6220_s8] sm:$0x1] }
 0x2ff   : > { %5227 = vmatpush3.bf16.msra.mxu1 %v5226_v12  ;;  %5231 = vmatpush3.bf16.msra.mxu0 %v5230_v13  ;;  %v5276_v12 = vpack.c.bf16 %v3537_v8, %v3536_v6  ;;  %v3508_v13 = vld [vmem:[#allocation6 + $0x370] sm:$0xff]  ;;  %v3698_v6 = vld [vmem:[#allocation6 + $0x4c0] sm:$0xff] }
 0x300   : > { %3612 = vmatprep.mubr.f32.mxu0 %v3543_v21  ;;  %5233 = vmatprep.subr.bf16.mxu0 %v5232_v16  ;;  %v5256_v16 = vpack.c.bf16 %v3525_v10, %v3524_v9  ;;  %v3699_v9 = vld [vmem:[#allocation6 + $0x4c8] sm:$0xff]  ;;  %v3728_v10 = vld [vmem:[#allocation6 + $0x5b0] sm:$0xff] }
 0x301   : > { %5260 = vmatprep.subr.bf16.mxu1 %v5618_v0 }
 0x302   : > { %4792 = vmatmul.mubr.f32.vlgmr.msra.gmra.mrb[6].mxu1 %v3348_v25  ;;  %v5279_v25 = vpack.c.bf16 %v3539_v40, %v3538_v17  ;;  %v3701_v17 = vld [vmem:[#allocation6 + $0x4d8] sm:$0xff]  ;;  %v3730_v40 = vld [vmem:[#allocation6 + $0x5c0] sm:$0xff] }
 0x303   : > { %5235 = vmatpush3.bf16.msra.mxu0 %v5234_v22  ;;  %5262 = vmatpush3.bf16.msra.mxu1 %v5261_v23  ;;  %v5258_v22 = vpack.c.bf16 %v3509_v14, %v3508_v13  ;;  %v5343_v23 = vadd.f32 %v6120_v3, %v2325_v15  ;;  %v5286_v3 = vpack.c.bf16 %v3691_v29, %v3690_v28  ;;  %v3717_v13 = vld [vmem:[#allocation6 + $0x558] sm:$0xff] }
 0x304   : > { %5237 = vmatprep.subr.bf16.mxu0 %v5236_v26  ;;  %5263 = vmatprep.subr.bf16.mxu1 %v5618_v0  ;;  %v3540_v26 = vld [vmem:[#allocation6 + $0x470] sm:$0xff]  ;;  %v5302_v14 = vpack.c.bf16 %v3699_v9, %v3698_v6  ;;  %v3721_v28 = vld [vmem:[#allocation6 + $0x578] sm:$0xff] }
 0x305   : > { %4826 = vmatprep.mubr.msk.f32.mxu1 %vm5620_vm0, %v5619_v1  ;;  %v5282_v33 = vpack.c.bf16 %v3541_v27, %v3540_v26  ;;  %v3732_v26 = vld [vmem:[#allocation6 + $0x5d0] sm:$0xff] }
 0x306   : > { %v3720_v27 = vld [vmem:[#allocation6 + $0x570] sm:$0xff] }
 0x307   : > { %5239 = vmatpush3.bf16.msra.mxu0 %v5238_v31  ;;  %5265 = vmatpush3.bf16.msra.mxu1 %v5264_v32  ;;  %v3708_v31 = vld [vmem:[#allocation6 + $0x510] sm:$0xff]  ;;  %v3709_v32 = vld [vmem:[#allocation6 + $0x518] sm:$0xff] }
 0x308   : > { %5241 = vmatprep.subr.bf16.mxu0 %v5240_v34  ;;  %5266 = vmatprep.subr.bf16.mxu1 %v5618_v0  ;;  %v3692_v34 = vld [vmem:[#allocation6 + $0x490] sm:$0xff]  ;;  %v5288_v36 = vpack.c.bf16 %v3709_v32, %v3708_v31 }
 0x309   : > { %v3704_v32 = vld [vmem:[#allocation6 + $0x4f0] sm:$0xff] }
 0x30b   : > { %5243 = vmatpush3.bf16.msra.mxu0 %v5242_v47  ;;  %5268 = vmatpush3.bf16.msra.mxu1 %v5267_v42  ;;  %v3710_v47 = vld [vmem:[#allocation6 + $0x520] sm:$0xff]  ;;  %v3711_v42 = vld [vmem:[#allocation6 + $0x528] sm:$0xff] }
 0x30c   : > { %5245 = vmatprep.subr.bf16.mxu0 %v5244_v45  ;;  %5269 = vmatprep.subr.bf16.mxu1 %v5618_v0  ;;  %v5290_v45 = vpack.c.bf16 %v3693_v38, %v3692_v34  ;;  %v5292_v52 = vpack.c.bf16 %v3711_v42, %v3710_v47  ;;  %v3734_v34 = vld [vmem:[#allocation6 + $0x5e0] sm:$0xff]  ;;  %v3736_v42 = vld [vmem:[#allocation6 + $0x5f0] sm:$0xff] }
 0x30f   : > { %5247 = vmatpush3.bf16.msra.mxu0 %v5246_v55  ;;  %5271 = vmatpush3.bf16.msra.mxu1 %v5270_v56  ;;  %v3724_v55 = vld [vmem:[#allocation6 + $0x590] sm:$0xff]  ;;  %v3725_v56 = vld [vmem:[#allocation6 + $0x598] sm:$0xff] }
 0x310   : > { %5249 = vmatprep.subr.bf16.mxu0 %v5248_v58  ;;  %5272 = vmatprep.subr.bf16.mxu1 %v5618_v0  ;;  %v3713_v58 = vld [vmem:[#allocation6 + $0x538] sm:$0xff]  ;;  %v5320_v59 = vpack.c.bf16 %v3725_v56, %v3724_v55 }
 0x311   : > { %v5296_v61 = vpack.c.bf16 %v3713_v58, %v3712_v57 }
 0x313   : > { %5251 = vmatpush3.bf16.msra.mxu0 %v5250_v2  ;;  %5274 = vmatpush3.bf16.msra.mxu1 %v5273_v4  ;;  %v3727_v2 = vld [vmem:[#allocation6 + $0x5a8] sm:$0xff]  ;;  %v3714_v4 = vld [vmem:[#allocation6 + $0x540] sm:$0xff] }
 0x314   : > { %5253 = vmatprep.subr.bf16.mxu0 %v5252_v5  ;;  %5275 = vmatprep.subr.bf16.mxu1 %v5618_v0  ;;  %v5298_v5 = vpack.c.bf16 %v3697_v62, %v3696_v60  ;;  %v5323_v37 = vpack.c.bf16 %v3727_v2, %v3726_v63  ;;  %v5300_v8 = vpack.c.bf16 %v3715_v43, %v3714_v4 }
 0x315   : > { %v4181_v18 = vpop.f32.mrb[6].mxu0 }
 0x316   : > { %v4182_v21 = vpop.f32.mrb[7].mxu0 }
 0x317   : > { %v4183_v24 = vadd.f32 %v4182_v21, %v4181_v18  ;;  %5255 = vmatpush3.bf16.msra.mxu0 %v5254_v11  ;;  %5277 = vmatpush3.bf16.msra.mxu1 %v5276_v12  ;;  %v3729_v11 = vld [vmem:[#allocation6 + $0x5b8] sm:$0xff]  ;;  %v3716_v12 = vld [vmem:[#allocation6 + $0x550] sm:$0xff]  ;;  %v3731_v18 = vld [vmem:[#allocation6 + $0x5c8] sm:$0xff] }
 0x318   : > { %5257 = vmatprep.subr.bf16.mxu0 %v5256_v16  ;;  %5278 = vmatprep.subr.bf16.mxu1 %v5618_v0  ;;  %v5326_v15 = vpack.c.bf16 %v3729_v11, %v3728_v10  ;;  %v3700_v16 = vld [vmem:[#allocation6 + $0x4d0] sm:$0xff] }
 0x319   : > { %v6140_v30 = vadd.f32 %v5343_v23, %v4183_v24  ;;  %v5306_v21 = vpack.c.bf16 %v3701_v17, %v3700_v16  ;;  %v3702_v23 = vld [vmem:[#allocation6 + $0x4e0] sm:$0xff]  ;;  %v5308_v24 = vpack.c.bf16 %v3719_v20, %v3718_v19 }
 0x31b   : > { %5259 = vmatpush3.bf16.msra.mxu0 %v5258_v22  ;;  %5280 = vmatpush3.bf16.msra.mxu1 %v5279_v25  ;;  %v5329_v22 = vpack.c.bf16 %v3731_v18, %v3730_v40  ;;  %v3703_v25 = vld [vmem:[#allocation6 + $0x4e8] sm:$0xff] }
 0x31c   : > { %5281 = vmatprep.subr.bf16.mxu1 %v5618_v0  ;;  %5285 = vmatprep.subr.bf16.mxu0 %v5284_v49  ;;  %v3733_v49 = vld [vmem:[#allocation6 + $0x5d8] sm:$0xff]  ;;  %v5310_v29 = vpack.c.bf16 %v3703_v25, %v3702_v23 }
 0x31d   : > { %v5332_v31 = vpack.c.bf16 %v3733_v49, %v3732_v26 }
 0x31e   : > { %3613 = vmatmul.mubr.f32.vlgmr.msra.gmra.mrb[16].mxu0 %v3542_v35  ;;  %v3735_v35 = vld [vmem:[#allocation6 + $0x5e8] sm:$0xff] }
 0x31f   : > { %5283 = vmatpush3.bf16.msra.mxu1 %v5282_v33  ;;  %5287 = vmatpush3.bf16.msra.mxu0 %v5286_v3  ;;  %v5312_v33 = vpack.c.bf16 %v3721_v28, %v3720_v27  ;;  %v3705_v3 = vld [vmem:[#allocation6 + $0x4f8] sm:$0xff]  ;;  %v5335_v47 = vpack.c.bf16 %v3735_v35, %v3734_v34 }
 0x320   : > { %3808 = vmatprep.mubr.f32.mxu0 %v3739_v44  ;;  %5289 = vmatprep.subr.bf16.mxu0 %v5288_v36  ;;  %v5314_v41 = vpack.c.bf16 %v3705_v3, %v3704_v32  ;;  %v3737_v44 = vld [vmem:[#allocation6 + $0x5f8] sm:$0xff] }
 0x321   : > { %5316 = vmatprep.subr.bf16.mxu1 %v5618_v0 }
 0x322   : > { %4827 = vmatmul.mubr.f32.vlgmr.msra.gmra.mrb[6].mxu1 %v3544_v51  ;;  %v3740_v51 = vrot.slane %v6110_v7, 3 }
 0x323   : > { %5291 = vmatpush3.bf16.msra.mxu0 %v5290_v45  ;;  %5318 = vmatpush3.bf16.msra.mxu1 %v5317_v46  ;;  %v5338_v46 = vpack.c.bf16 %v3737_v44, %v3736_v42 }
 0x324   : > { %5293 = vmatprep.subr.bf16.mxu0 %v5292_v52  ;;  %5319 = vmatprep.subr.bf16.mxu1 %v5618_v0 }
 0x325   : > { %4861 = vmatprep.mubr.msk.f32.mxu1 %vm5620_vm0, %v5619_v1  ;;  %v5304_v1 = vpack.c.bf16 %v3717_v13, %v3716_v12 }
 0x327   : > { %5295 = vmatpush3.bf16.msra.mxu0 %v5294_v54  ;;  %5321 = vmatpush3.bf16.msra.mxu1 %v5320_v59 }
 0x328   : > { %5297 = vmatprep.subr.bf16.mxu0 %v5296_v61  ;;  %5322 = vmatprep.subr.bf16.mxu1 %v5618_v0 }
 0x32b   : > { %5299 = vmatpush3.bf16.msra.mxu0 %v5298_v5  ;;  %5324 = vmatpush3.bf16.msra.mxu1 %v5323_v37 }
 0x32c   : > { %5301 = vmatprep.subr.bf16.mxu0 %v5300_v8  ;;  %5325 = vmatprep.subr.bf16.mxu1 %v5618_v0 }
 0x32f   : > { %5303 = vmatpush3.bf16.msra.mxu0 %v5302_v14  ;;  %5327 = vmatpush3.bf16.msra.mxu1 %v5326_v15 }
 0x330   : > { %5305 = vmatprep.subr.bf16.mxu0 %v5304_v1  ;;  %5328 = vmatprep.subr.bf16.mxu1 %v5618_v0 }
 0x333   : > { %5307 = vmatpush3.bf16.msra.mxu0 %v5306_v21  ;;  %5330 = vmatpush3.bf16.msra.mxu1 %v5329_v22 }
 0x334   : > { %5309 = vmatprep.subr.bf16.mxu0 %v5308_v24  ;;  %5331 = vmatprep.subr.bf16.mxu1 %v5618_v0 }
 0x335   : > { %v4233_v36 = vpop.f32.mrb[8].mxu0 }
 0x336   : > { %v4234_v38 = vpop.f32.mrb[9].mxu0 }
 0x337   : > { %v4235_v39 = vadd.f32 %v4234_v38, %v4233_v36  ;;  %5311 = vmatpush3.bf16.msra.mxu0 %v5310_v29  ;;  %5333 = vmatpush3.bf16.msra.mxu1 %v5332_v31 }
 0x338   : > { %5313 = vmatprep.subr.bf16.mxu0 %v5312_v33  ;;  %5334 = vmatprep.subr.bf16.mxu1 %v5618_v0 }
 0x339   : > { %v5345_v45 = vadd.f32 %v6140_v30, %v4235_v39 }
 0x33b   : > { %5315 = vmatpush3.bf16.msra.mxu0 %v5314_v41  ;;  %5336 = vmatpush3.bf16.msra.mxu1 %v5335_v47 }
 0x33c   : > { %5337 = vmatprep.subr.bf16.mxu1 %v5618_v0 }
 0x33e   : > { %3809 = vmatmul.mubr.f32.vlgmr.msra.gmra.mrb[18].mxu0 %v3738_v50 }
 0x33f   : > { %5339 = vmatpush3.bf16.msra.mxu1 %v5338_v46 }
 0x342   : > { %4862 = vmatmul.mubr.f32.vlgmr.msra.gmra.mrb[6].mxu1 %v3740_v51 }
 0x355   : > { %v4285_v52 = vpop.f32.mrb[10].mxu0 }
 0x356   : > { %v4286_v53 = vpop.f32.mrb[11].mxu0 }
 0x357   : > { %v4287_v55 = vadd.f32 %v4286_v53, %v4285_v52 }
 0x359   : > { %v5346_v56 = vadd.f32 %v5345_v45, %v4287_v55 }
 0x35b   : > { %v3098_v57 = vpop.f32.mrb[4].mxu1 }
 0x35c   : > { %v5347_v58 = vadd.f32 %v5346_v56, %v3098_v57  ;;  %v4723_v54 = vpop.f32.mrb[5].mxu1 }
 0x35e   : > { %v3103_v13 = vmax.f32 %v5347_v58, 0.0 }
 0x3b1   : > { %v4337_v30 = vpop.f32.mrb[12].mxu0 }
 0x3b2   : > { %v4338_v59 = vpop.f32.mrb[13].mxu0 }
 0x3b3   : > { %v4339_v60 = vadd.f32 %v4338_v59, %v4337_v30 }
 0x3b5   : > { %v5348_v62 = vadd.f32 %v4339_v60, %v3104_v48 }
 0x3d1   : > { %v4389_v0 = vpop.f32.mrb[14].mxu0 }
 0x3d2   : > { %v4390_v61 = vpop.f32.mrb[15].mxu0 }
 0x3d3   : > { %v4391_v63 = vadd.f32 %v4390_v61, %v4389_v0 }
 0x3d5   : > { %v5349_v7 = vadd.f32 %v5348_v62, %v4391_v63 }
 0x3f1   : > { %v4441_v2 = vpop.f32.mrb[16].mxu0 }
 0x3f2   : > { %v4442_v4 = vpop.f32.mrb[17].mxu0 }
 0x3f3   : > { %v4443_v43 = vadd.f32 %v4442_v4, %v4441_v2 }
 0x3f5   : > { %v5350_v5 = vadd.f32 %v5349_v7, %v4443_v43 }
 0x411   : > { %v4493_v37 = vpop.f32.mrb[18].mxu0 }
 0x412   : > { %v4494_v6 = vpop.f32.mrb[19].mxu0 }
 0x413   : > { %v4495_v8 = vadd.f32 %v4494_v6, %v4493_v37 }
 0x415   : > { %v3880_v9 = vpop.f32.mrb[6].mxu1  ;;  %v5351_v10 = vadd.f32 %v5350_v5, %v4495_v8 }
 0x416   : > { %v4863_v11 = vpop.f32.mrb[7].mxu1 }
 0x417   : > { %v5352_v12 = vadd.f32 %v5351_v10, %v3880_v9 }
 0x419   : > { %v3885_v14 = vmax.f32 %v5352_v12, 0.0 }
 0x41b   : > { %v3886_v15 = vadd.f32 %v3885_v14, %v3103_v13 }
 0x41d   : > { %v3888_v16 = vsel %vm3887_vm12, %v3886_v15, -inf }
 0x41e   : > { %3889 = vmax.xlane.f32.xlu0 %v3888_v16 }
 0x4ab   : > { %v3890_v1 = vpop.xlane.xlu0 %3889 }
 0x4ac   : > { %v3891_v17 = vsub.f32 %v3886_v15, %v3890_v1 }
 0x4ae   : > { %v3892_v40 = vmul.f32 1.442695, %v3891_v17 }
 0x4b0   : > { %5481 = vpow2.f32 %v3892_v40 }
 0x4ba   : > { %v5482_v18 = vpop.eup %5481 }
 0x4bb   : > { %v3894_v19 = vsel %vm3887_vm12, %v5482_v18, 0.0 }
 0x4bc   : > { %3895 = vadd.xlane.f32.xlu1 %v3894_v19 }
 0x549   : > { %v3896_v20 = vpop.xlane.xlu1 %3895 }
 0x54a   : > { %5483 = vlog2.f32 %v3896_v20 }
 0x554   : > { %v5484_v21 = vpop.eup %5483 }
 0x555   : > { %v3898_v22 = vmul.f32 0.6931472, %v5484_v21 }
 0x557   : > { %v3899_v23 = vadd.f32 %v3898_v22, %v3890_v1 }
 0x559   : > { %v3900_v24 = vsub.f32 %v3886_v15, %v3899_v23 }
 0x55b   : > { %3901 = vst.msk [vmem:[%s408_s13] sm:$0x1] %vm3887_vm12, %v3900_v24 }
 0x55c   : > { %5555 = shalt.err (!%p5552_p11)
}
 0x55d   : > { %s5556_s14 = scalar_lea.hbm %s6169_s19, 16  ;;  %s5560_s23 = scalar_lea.hbm %s6223_s11, 32 }
 0x55e   : > { %p5557_p13 = scmp.ne.s32.totalorder %s6169_s19, %s5556_s14  ;;  %p5561_p6 = scmp.lt.u32.totalorder %s6169_s19, %s6223_s11 }
 0x55f   : > { %p5562_p9 = scmp.lt.u32.totalorder %s5560_s23, %s5556_s14  ;;  %p5564_p12 = scmp.lt.u32.totalorder %s5556_s14, %s6169_s19 }
 0x560   : > { %p5558_p5 = pnand %p5557_p13, %p6246_p1 }
 0x561   : > { %p5563_p10 = por %p5562_p9, %p5561_p6 }
 0x562   : > { %p5559_p0 = pneg %p5558_p5 }
 0x563   : > { %p5565_p2 = por %p5564_p12, %p5563_p10 }
 0x565   : > { %p5566_p3 = pnand %p5565_p2, %p5559_p0 }
 0x567   : > { %5569 = shalt.err (!%p5566_p3)
}
 0x568   : > { %5410 = dma.vmem_to_hbm [thread:$0]  (%p6246_p1), %s6171_s15, 16, %s6169_s19, %s3903_s26  }
 0x569 PF: > { %s6247_s13 = sld [smem:[#allocation12_spill]]  ;;  %s6248_s16 = sld [smem:[#allocation16_spill]] }
 0x56a   : > { %p5427_p4 = scmp.ge.s32.totalorder %s5612_s20, 2 }
 0x56f   : > { %s3927_s22 = sand.u32 1, %s6247_s13   ;;  %p6249_p7 = scmp.ne.s32.totalorder %s6248_s16, 0 }
 0x570   : > { %s3928_s24 = scalar_lea.sflag [#allocation5], %s3927_s22 }
 0x571   : > { %p5420_p8 = pnand %p5427_p4, %p6249_p7 }
 0x573   : > { %5595 = dma.done.wait (!%p5420_p8), %s3928_s24, 16  }
 0x574   : > { %5597 = vsyncadd (!%p5420_p8), %s3928_s24, 4294967280  ;;  %s6250_s20 = sld [smem:[#allocation14_spill]]  ;;  %s6251_s21 = sld [smem:[#allocation13_spill]] }
 0x575   : > { %s6252_s19 = sld [smem:[#allocation15_spill]]  ;;  %s6253_s17 = smov %s5604_s18 }
 0x57a   : > { %p23_p11 = scmp.ge.s32.totalorder %s6250_s20, 4   ;;  %s6254_s18 = smov %s6251_s21 }
 0x57c   :  { %25 = sbr.rel (!%p23_p11) target bundleno = 5 (0x5), region = 122 }
 0x583   :  { %3932 = vsyncpa [#allocation4], 1 }
 0x584   :  { %3934 = vsyncpa [#allocation4 + $0x1], 1 }
 0x585   :  { %3935 = vsyncpa [#allocation7], 1 }
 0x586   :  { %3936 = vsyncpa [#allocation5], 1 }
 0x587   :  { %3938 = vsyncpa [#allocation5 + $0x1], 1 }

</bundles_post_ra>
